<compile_context>
chip_gen: v6e
topology: v6e:2x2x1
jax: 0.10.0
libtpu: 0.0.40
codegen_flags: <defaults>
</compile_context>

<pallas_src>
import jax
import jax.numpy as jnp
from jax import lax
from jax.experimental import pallas as pl
from jax.experimental.pallas import tpu as pltpu


def _round_up(x, m):
    return ((x + m - 1) // m) * m


def _cdiv(a, b):
    return -(-a // b)


# -----------------------------------------------------------------------------
# Pallas kernel: one batch tile (TB rows) per grid step.  Everything lane-dense.
# -----------------------------------------------------------------------------
def _dien_scorer_kernel(seq_ref, tgt_ref, mask_ref,
                        wa_big_ref, ba0_ref, wa1_ref, ba1_ref, wao_ref, bao_ref,
                        repd_ref, esel_ref, wn_ref, bn_ref,
                        wf0_ref, bf0_ref, wf1_ref, bf1_ref, wfo_ref, bfo_ref,
                        out_ref):
    f32 = jnp.float32
    S = seq_ref[...]                       # (TB, L*D)  cd, lane-dense
    T = tgt_ref[...]                       # (TB, D)    cd
    mask = mask_ref[...]                   # (TB, L)    f32
    cd = S.dtype

    # ---- activation (attention) unit -------------------------------------
    # VPU products in f32 (v5e has no bf16 VALU); only MXU operands are cd.
    S32 = S.astype(f32)
    # replicate target across the L lane-blocks with a 0/1 selector matmul
    t_rep = jnp.dot(T, repd_ref[...], preferred_element_type=f32)      # (TB, L*D)
    P = (S32 * t_rep).astype(cd)                                       # t * seq

    # concat([seq, t*seq, t - seq]) @ Wa0 as ONE K=(2*L*D + D) matmul
    lhs = jnp.concatenate([S, P, T], axis=1)                           # (TB, 2LD+D)
    h0 = jax.nn.sigmoid(
        jnp.dot(lhs, wa_big_ref[...], preferred_element_type=f32) + ba0_ref[...])
    h1 = jax.nn.sigmoid(
        jnp.dot(h0.astype(cd), wa1_ref[...], preferred_element_type=f32)
        + ba1_ref[...])                                                # (TB, L*H2)

    # per-position logit via block column-pool; softmax=False -> padding = 0
    logits = (jnp.dot(h1.astype(cd), wao_ref[...], preferred_element_type=f32)
              + bao_ref[...])                                          # (TB, L)
    w = logits * mask                                                  # (TB, L)

    # weighted sum over positions folded into norm Linear(D, D):
    #   (sum_l w_l * seq_l) @ Wn == (S * expand(w)) @ tile(Wn, (L, 1))
    w_exp = jnp.dot(w.astype(cd), esel_ref[...], preferred_element_type=f32)  # (TB, L*D)
    a = (jnp.dot((S32 * w_exp).astype(cd), wn_ref[...],
                 preferred_element_type=f32) + bn_ref[...])            # (TB, D) f32

    # ---- fc MLP over concat([attn_out, target, target*attn_out]) ----------
    a_cd = a.astype(cd)
    prod = (a * T.astype(f32)).astype(cd)                              # f32 VPU product
    fc_in = jnp.concatenate([a_cd, T, prod], axis=1)                   # (TB, 3D)
    hf = jax.nn.sigmoid(
        jnp.dot(fc_in, wf0_ref[...], preferred_element_type=f32) + bf0_ref[...])
    hf = jax.nn.sigmoid(
        jnp.dot(hf.astype(cd), wf1_ref[...], preferred_element_type=f32)
        + bf1_ref[...])                                                # (TB, F2)

    # final Linear(F2, 1): contract hf's last dim (no explicit hf.T) -> (1, TB)
    score = lax.dot_general(wfo_ref[...], hf.astype(cd),
                            (((1,), (1,)), ((), ())),
                            preferred_element_type=f32) + bfo_ref[...]
    out_ref[0] = score


_W_ORDER = ("wa_big", "ba0", "wa1", "ba1", "wao", "bao", "repd", "esel",
            "wn", "bn", "wf0", "bf0", "wf1", "bf1", "wfo", "bfo")


# -----------------------------------------------------------------------------
# Wrapper
# -----------------------------------------------------------------------------
def dien_scorer_pallas(seq_emb, target_emb, mask, item_bias, params,
                       *, batch_tile=128, compute_dtype=jnp.bfloat16):
    """DIENScorer hot path in a single batch-tiled Pallas kernel. Returns (B,)."""
    B, L, D = seq_emb.shape
    H1 = params["wa0"].shape[1]
    H2 = params["wa1"].shape[1]
    F1 = params["wf0"].shape[1]
    F2 = params["wf1"].shape[1]
    LD = L * D
    cd = compute_dtype
    f32 = jnp.float32

    # Batch tile: multiple of 8 sublanes; prefer >= 2 grid steps when the batch
    # allows (keeps both v7x TensorCores busy). In production keep batch_tile a
    # multiple of 128 so the (1, TB) output block stores unmasked.
    TB = _round_up(max(8, min(int(batch_tile), B)), 8)
    if B >= 16 and _cdiv(B, TB) < 2:
        TB = _round_up(_cdiv(B, 2), 8)
    num_tiles = _cdiv(B, TB)
    B_pad = num_tiles * TB

    # ---- data: lane-dense layouts, bf16 DMA by default -------------------
    seq2 = seq_emb.reshape(B, LD).astype(cd)      # (B, L*D) lane-dense
    tgt = target_emb.astype(cd)                   # (B, D)
    mask2 = mask.astype(f32)                      # (B, L) 2-D (not (B, L, 1))
    if B_pad != B:
        pad = B_pad - B
        seq2 = jnp.pad(seq2, ((0, pad), (0, 0)))
        tgt = jnp.pad(tgt, ((0, pad), (0, 0)))
        mask2 = jnp.pad(mask2, ((0, pad), (0, 0)))

    # ---- weights (built once, wrapper side) -------------------------------
    row = lambda b: jnp.asarray(b, f32).reshape(1, -1)   # normalize bias shapes
    eye_l = jnp.eye(L, dtype=f32)

    wa0 = jnp.asarray(params["wa0"], f32)
    wa_s, wa_p, wa_d = wa0[:D], wa0[D:2 * D], wa0[2 * D:]
    # rows: [ blkdiag(Wa_s - Wa_d) ; blkdiag(Wa_p) ; tile(Wa_d, (1, L)) ]
    wa_big = jnp.concatenate([jnp.kron(eye_l, wa_s - wa_d),
                              jnp.kron(eye_l, wa_p),
                              jnp.tile(wa_d, (1, L))], axis=0)          # (2LD+D, L*H1)
    wa1_blk = jnp.kron(eye_l, jnp.asarray(params["wa1"], f32))          # (L*H1, L*H2)
    wao_blk = jnp.kron(eye_l, jnp.asarray(params["wao"], f32).reshape(-1, 1))  # (L*H2, L)
    repd = jnp.tile(jnp.eye(D, dtype=f32), (1, L))                      # (D, L*D)
    esel = jnp.kron(eye_l, jnp.ones((1, D), f32))                       # (L, L*D)
    wn_rep = jnp.tile(jnp.asarray(params["wn"], f32), (L, 1))           # (L*D, D)

    weights = {
        "wa_big": wa_big.astype(cd),
        "ba0": jnp.tile(row(params["ba0"]), (1, L)),
        "wa1": wa1_blk.astype(cd),
        "ba1": jnp.tile(row(params["ba1"]), (1, L)),
        "wao": wao_blk.astype(cd),
        "bao": row(params["bao"]).reshape(1, 1),
        "repd": repd.astype(cd),
        "esel": esel.astype(cd),
        "wn": wn_rep.astype(cd),
        "bn": row(params["bn"]),
        "wf0": jnp.asarray(params["wf0"], f32).astype(cd),
        "bf0": row(params["bf0"]),
        "wf1": jnp.asarray(params["wf1"], f32).astype(cd),
        "bf1": row(params["bf1"]),
        "wfo": row(params["wfo"]).astype(cd),                           # (1, F2)
        "bfo": row(params["bfo"]).reshape(1, 1),
    }
    inputs = [seq2, tgt, mask2] + [weights[k] for k in _W_ORDER]

    data_specs = [
        pl.BlockSpec((TB, LD), lambda i: (i, 0)),
        pl.BlockSpec((TB, D), lambda i: (i, 0)),
        pl.BlockSpec((TB, L), lambda i: (i, 0)),
    ]
    # Parameters: constant block index -> fetched once, VMEM-resident across tiles.
    weight_specs = [pl.BlockSpec(weights[k].shape, lambda i: (0, 0))
                    for k in _W_ORDER]

    grid_spec = pltpu.PrefetchScalarGridSpec(
        num_scalar_prefetch=0,
        grid=(num_tiles,),
        in_specs=data_specs + weight_specs,
        out_specs=pl.BlockSpec((1, 1, TB), lambda i: (i, 0, 0)),
    )

    # Advisory cost estimate (helps XLA schedule surrounding gathers).
    flops = int(2 * B_pad * (D * LD + (2 * LD + D) * L * H1 + (L * H1) * (L * H2)
                             + (L * H2) * L + L * LD + LD * D
                             + 3 * D * F1 + F1 * F2 + F2))
    transcendentals = int(B_pad * (L * H1 + L * H2 + F1 + F2))
    bytes_accessed = int(sum(int(x.size) * x.dtype.itemsize for x in inputs)
                         + B_pad * 4)

    out = pl.pallas_call(
        _dien_scorer_kernel,
        out_shape=jax.ShapeDtypeStruct((num_tiles, 1, TB), jnp.float32),
        grid_spec=grid_spec,
        compiler_params=pltpu.CompilerParams(
            dimension_semantics=("parallel",),
            vmem_limit_bytes=32 * 1024 * 1024),
        cost_estimate=pl.CostEstimate(
            flops=flops, transcendentals=transcendentals,
            bytes_accessed=bytes_accessed),
    )(*inputs)

    scores = out.reshape(-1)[:B]
    # per-item scalar bias: trivial gather+add, kept in the wrapper
    return scores + item_bias[:, 0]


# -----------------------------------------------------------------------------
# Plain-JAX reference (unsplit weights, same math) for the correctness check
# -----------------------------------------------------------------------------
def dien_scorer_ref(seq_emb, target_emb, mask, item_bias, p):
    B, L, D = seq_emb.shape
    tgt_b = jnp.broadcast_to(target_emb[:, None, :], (B, L, D))
    key = jnp.concatenate([seq_emb, tgt_b * seq_emb, tgt_b - seq_emb], axis=-1)
    key2d = key.reshape(B * L, 3 * D)
    h = jax.nn.sigmoid(key2d @ p["wa0"] + p["ba0"])
    h = jax.nn.sigmoid(h @ p["wa1"] + p["ba1"])
    attn_w = (h @ p["wao"] + p["bao"]).reshape(B, L) * mask
    attn_out = jnp.sum(attn_w[:, :, None] * seq_emb, axis=1)
    attn_out = attn_out @ p["wn"] + p["bn"]
    cat = jnp.concatenate([attn_out, target_emb, target_emb * attn_out], axis=-1)
    h = jax.nn.sigmoid(cat @ p["wf0"] + p["bf0"])
    h = jax.nn.sigmoid(h @ p["wf1"] + p["bf1"])
    score = h @ p["wfo"] + p["bfo"]
    return (score + item_bias)[:, 0]


# -----------------------------------------------------------------------------
# Deterministic parameter construction (mirrors the module's __init__ shapes)
# -----------------------------------------------------------------------------
def _linear(key, fan_in, fan_out):
    kw, kb = jax.random.split(key)
    bound = 1.0 / jnp.sqrt(fan_in)
    w = jax.random.uniform(kw, (fan_in, fan_out), jnp.float32, -bound, bound)
    b = jax.random.uniform(kb, (1, fan_out), jnp.float32, -bound, bound)
    return w, b


def make_params(key, num_users, num_items, embed_dim, attention_mlp, fc_mlp):
    keys = jax.random.split(key, 12)
    D = embed_dim

    user_emb = jax.random.normal(keys[0], (num_users, D), jnp.float32).at[0].set(0.0)
    item_emb = jax.random.normal(keys[1], (num_items, D), jnp.float32).at[0].set(0.0)
    item_bias = jax.random.normal(keys[2], (num_items, 1), jnp.float32).at[0].set(0.0)

    p = {"user_embedding": user_emb, "item_embedding": item_emb,
         "item_bias_table": item_bias}

    # activation (attention) unit MLP: [3D] + attention_mlp -> 1
    p["wa0"], p["ba0"] = _linear(keys[3], 3 * D, attention_mlp[0])
    p["wa1"], p["ba1"] = _linear(keys[4], attention_mlp[0], attention_mlp[1])
    p["wao"], p["bao"] = _linear(keys[5], attention_mlp[1], 1)

    # norm: Linear(D, D)   (batch_norm=False path)
    p["wn"], p["bn"] = _linear(keys[6], D, D)

    # fc: MLP([3D] + fc_mlp) + Linear(fc_mlp[-1], 1)
    p["wf0"], p["bf0"] = _linear(keys[7], 3 * D, fc_mlp[0])
    p["wf1"], p["bf1"] = _linear(keys[8], fc_mlp[0], fc_mlp[1])
    p["wfo"], p["bfo"] = _linear(keys[9], fc_mlp[1], 1)
    return p


# -----------------------------------------------------------------------------
# Driver
# -----------------------------------------------------------------------------
if __name__ == "__main__":
    B, L = 50, 8                      # B not a multiple of the tile -> exercises padding
    num_users, num_items, embed_dim = 20, 200, 32
    attention_mlp = [32, 16]
    fc_mlp = [64, 32]

    root = jax.random.PRNGKey(0)
    k_param, k_seq, k_tgt, k_pad = jax.random.split(root, 4)

    params = make_params(k_param, num_users, num_items, embed_dim,
                         attention_mlp, fc_mlp)

    # synthetic batch: behaviour sequence (with padding zeros) + target item
    seq_ids = jax.random.randint(k_seq, (B, L), 1, num_items)
    pad = jax.random.bernoulli(k_pad, 0.25, (B, L))
    seq_ids = jnp.where(pad, 0, seq_ids)                 # 0 == padding idx
    target_ids = jax.random.randint(k_tgt, (B,), 1, num_items)

    # embedding gathers stay in plain JAX (glue)
    seq_emb = params["item_embedding"][seq_ids]          # (B, L, D)
    target_emb = params["item_embedding"][target_ids]    # (B, D)
    item_bias = params["item_bias_table"][target_ids]    # (B, 1)
    mask = (seq_ids != 0).astype(jnp.float32)            # (B, L)

    ref = dien_scorer_ref(seq_emb, target_emb, mask, item_bias, params)

    # f32 path with a small tile -> 4 grid steps (padding + pipelining exercised)
    out_f32 = dien_scorer_pallas(seq_emb, target_emb, mask, item_bias, params,
                                 batch_tile=16, compute_dtype=jnp.float32)
    out_f32 = jax.block_until_ready(out_f32)
    assert out_f32.shape == (B,)
    assert jnp.allclose(out_f32, ref, rtol=2e-3, atol=2e-3), (out_f32, ref)

    # default path: bf16 DMA + bf16 MXU operands (all generations), f32 VPU/EUP
    # epilogue; auto tile split -> 2 grid steps (one per v7x TensorCore)
    out_bf16 = dien_scorer_pallas(seq_emb, target_emb, mask, item_bias, params)
    out_bf16 = jax.block_until_ready(out_bf16)
    assert out_bf16.shape == (B,)
    assert jnp.allclose(out_bf16, ref, rtol=0.06, atol=0.3), (out_bf16, ref)

    print("KERNEL_OK")
</pallas_src>

<mosaic_0001>
module attributes {stable_mosaic.version = 11 : i64} {
  func.func @_dien_scorer_kernel(%arg0: i32, %arg1: memref<16x256xf32, #tpu.memory_space<vmem>>, %arg2: memref<16x32xf32, #tpu.memory_space<vmem>>, %arg3: memref<16x8xf32, #tpu.memory_space<vmem>>, %arg4: memref<544x256xf32, #tpu.memory_space<vmem>>, %arg5: memref<1x256xf32, #tpu.memory_space<vmem>>, %arg6: memref<256x128xf32, #tpu.memory_space<vmem>>, %arg7: memref<1x128xf32, #tpu.memory_space<vmem>>, %arg8: memref<128x8xf32, #tpu.memory_space<vmem>>, %arg9: memref<1x1xf32, #tpu.memory_space<vmem>>, %arg10: memref<32x256xf32, #tpu.memory_space<vmem>>, %arg11: memref<8x256xf32, #tpu.memory_space<vmem>>, %arg12: memref<256x32xf32, #tpu.memory_space<vmem>>, %arg13: memref<1x32xf32, #tpu.memory_space<vmem>>, %arg14: memref<96x64xf32, #tpu.memory_space<vmem>>, %arg15: memref<1x64xf32, #tpu.memory_space<vmem>>, %arg16: memref<64x32xf32, #tpu.memory_space<vmem>>, %arg17: memref<1x32xf32, #tpu.memory_space<vmem>>, %arg18: memref<1x32xf32, #tpu.memory_space<vmem>>, %arg19: memref<1x1xf32, #tpu.memory_space<vmem>>, %arg20: memref<1x1x16xf32, #tpu.memory_space<vmem>>) attributes {dimension_semantics = [#tpu.dimension_semantics<parallel>], iteration_bounds = array<i64: 4>, scalar_prefetch = 0 : i64, scratch_operands = 0 : i64, tpu.core_type = #tpu.core_type<tc>, window_params = [{transform_indices = @transform_0, window_bounds = array<i64: 16, 256>}, {transform_indices = @transform_1, window_bounds = array<i64: 16, 32>}, {transform_indices = @transform_2, window_bounds = array<i64: 16, 8>}, {pipeline_mode = #tpu.pipeline_mode<synchronous>, transform_indices = @transform_3, window_bounds = array<i64: 544, 256>}, {pipeline_mode = #tpu.pipeline_mode<synchronous>, transform_indices = @transform_4, window_bounds = array<i64: 1, 256>}, {pipeline_mode = #tpu.pipeline_mode<synchronous>, transform_indices = @transform_5, window_bounds = array<i64: 256, 128>}, {pipeline_mode = #tpu.pipeline_mode<synchronous>, transform_indices = @transform_6, window_bounds = array<i64: 1, 128>}, {pipeline_mode = #tpu.pipeline_mode<synchronous>, transform_indices = @transform_7, window_bounds = array<i64: 128, 8>}, {pipeline_mode = #tpu.pipeline_mode<synchronous>, transform_indices = @transform_8, window_bounds = array<i64: 1, 1>}, {pipeline_mode = #tpu.pipeline_mode<synchronous>, transform_indices = @transform_9, window_bounds = array<i64: 32, 256>}, {pipeline_mode = #tpu.pipeline_mode<synchronous>, transform_indices = @transform_10, window_bounds = array<i64: 8, 256>}, {pipeline_mode = #tpu.pipeline_mode<synchronous>, transform_indices = @transform_11, window_bounds = array<i64: 256, 32>}, {pipeline_mode = #tpu.pipeline_mode<synchronous>, transform_indices = @transform_12, window_bounds = array<i64: 1, 32>}, {pipeline_mode = #tpu.pipeline_mode<synchronous>, transform_indices = @transform_13, window_bounds = array<i64: 96, 64>}, {pipeline_mode = #tpu.pipeline_mode<synchronous>, transform_indices = @transform_14, window_bounds = array<i64: 1, 64>}, {pipeline_mode = #tpu.pipeline_mode<synchronous>, transform_indices = @transform_15, window_bounds = array<i64: 64, 32>}, {pipeline_mode = #tpu.pipeline_mode<synchronous>, transform_indices = @transform_16, window_bounds = array<i64: 1, 32>}, {pipeline_mode = #tpu.pipeline_mode<synchronous>, transform_indices = @transform_17, window_bounds = array<i64: 1, 32>}, {pipeline_mode = #tpu.pipeline_mode<synchronous>, transform_indices = @transform_18, window_bounds = array<i64: 1, 1>}, {transform_indices = @transform_19, window_bounds = array<i64: 1, 1, 16>}]} {
    %c0 = arith.constant 0 : index
    %c0_0 = arith.constant 0 : index
    %0 = vector.load %arg1[%c0, %c0_0] : memref<16x256xf32, #tpu.memory_space<vmem>>, vector<16x256xf32>
    %c0_1 = arith.constant 0 : index
    %c0_2 = arith.constant 0 : index
    %1 = vector.load %arg2[%c0_1, %c0_2] : memref<16x32xf32, #tpu.memory_space<vmem>>, vector<16x32xf32>
    %c0_3 = arith.constant 0 : index
    %c0_4 = arith.constant 0 : index
    %2 = vector.load %arg3[%c0_3, %c0_4] : memref<16x8xf32, #tpu.memory_space<vmem>>, vector<16x8xf32>
    %c0_5 = arith.constant 0 : index
    %c0_6 = arith.constant 0 : index
    %3 = vector.load %arg10[%c0_5, %c0_6] : memref<32x256xf32, #tpu.memory_space<vmem>>, vector<32x256xf32>
    %cst = arith.constant dense<0.000000e+00> : vector<16x256xf32>
    %4 = tpu.matmul %1, %3, %cst {dimension_numbers = #tpu.dot_dimension_numbers<[1], [0], [0], [1], [0, 0, 1, 1], [], []>} : vector<16x32xf32>, vector<32x256xf32>, vector<16x256xf32> -> vector<16x256xf32>
    %5 = arith.mulf %0, %4 : vector<16x256xf32>
    %6 = tpu.concatenate %0, %5, %1 in 1 : vector<16x256xf32>, vector<16x256xf32>, vector<16x32xf32> -> vector<16x544xf32>
    %c0_7 = arith.constant 0 : index
    %c0_8 = arith.constant 0 : index
    %7 = vector.load %arg4[%c0_7, %c0_8] : memref<544x256xf32, #tpu.memory_space<vmem>>, vector<544x256xf32>
    %cst_9 = arith.constant dense<0.000000e+00> : vector<16x256xf32>
    %8 = tpu.matmul %6, %7, %cst_9 {dimension_numbers = #tpu.dot_dimension_numbers<[1], [0], [0], [1], [0, 0, 1, 1], [], []>} : vector<16x544xf32>, vector<544x256xf32>, vector<16x256xf32> -> vector<16x256xf32>
    %c0_10 = arith.constant 0 : index
    %c0_11 = arith.constant 0 : index
    %9 = vector.load %arg5[%c0_10, %c0_11] : memref<1x256xf32, #tpu.memory_space<vmem>>, vector<1x256xf32>
    %10 = vector.broadcast %9 : vector<1x256xf32> to vector<16x256xf32>
    %11 = arith.addf %8, %10 : vector<16x256xf32>
    %12 = arith.negf %11 : vector<16x256xf32>
    %13 = math.exp %12 : vector<16x256xf32>
    %cst_12 = arith.constant 1.000000e+00 : f32
    %14 = vector.broadcast %cst_12 : f32 to vector<16x256xf32>
    %15 = arith.addf %14, %13 : vector<16x256xf32>
    %16 = arith.divf %14, %15 : vector<16x256xf32>
    %c0_13 = arith.constant 0 : index
    %c0_14 = arith.constant 0 : index
    %17 = vector.load %arg6[%c0_13, %c0_14] : memref<256x128xf32, #tpu.memory_space<vmem>>, vector<256x128xf32>
    %cst_15 = arith.constant dense<0.000000e+00> : vector<16x128xf32>
    %18 = tpu.matmul %16, %17, %cst_15 {dimension_numbers = #tpu.dot_dimension_numbers<[1], [0], [0], [1], [0, 0, 1, 1], [], []>} : vector<16x256xf32>, vector<256x128xf32>, vector<16x128xf32> -> vector<16x128xf32>
    %c0_16 = arith.constant 0 : index
    %c0_17 = arith.constant 0 : index
    %19 = vector.load %arg7[%c0_16, %c0_17] : memref<1x128xf32, #tpu.memory_space<vmem>>, vector<1x128xf32>
    %20 = vector.broadcast %19 : vector<1x128xf32> to vector<16x128xf32>
    %21 = arith.addf %18, %20 : vector<16x128xf32>
    %22 = arith.negf %21 : vector<16x128xf32>
    %23 = math.exp %22 : vector<16x128xf32>
    %cst_18 = arith.constant 1.000000e+00 : f32
    %24 = vector.broadcast %cst_18 : f32 to vector<16x128xf32>
    %25 = arith.addf %24, %23 : vector<16x128xf32>
    %26 = arith.divf %24, %25 : vector<16x128xf32>
    %c0_19 = arith.constant 0 : index
    %c0_20 = arith.constant 0 : index
    %27 = vector.load %arg8[%c0_19, %c0_20] : memref<128x8xf32, #tpu.memory_space<vmem>>, vector<128x8xf32>
    %cst_21 = arith.constant dense<0.000000e+00> : vector<16x8xf32>
    %28 = tpu.matmul %26, %27, %cst_21 {dimension_numbers = #tpu.dot_dimension_numbers<[1], [0], [0], [1], [0, 0, 1, 1], [], []>} : vector<16x128xf32>, vector<128x8xf32>, vector<16x8xf32> -> vector<16x8xf32>
    %c0_22 = arith.constant 0 : index
    %c0_23 = arith.constant 0 : index
    %29 = vector.load %arg9[%c0_22, %c0_23] : memref<1x1xf32, #tpu.memory_space<vmem>>, vector<1x1xf32>
    %30 = vector.broadcast %29 : vector<1x1xf32> to vector<16x8xf32>
    %31 = arith.addf %28, %30 : vector<16x8xf32>
    %32 = arith.mulf %31, %2 : vector<16x8xf32>
    %c0_24 = arith.constant 0 : index
    %c0_25 = arith.constant 0 : index
    %33 = vector.load %arg11[%c0_24, %c0_25] : memref<8x256xf32, #tpu.memory_space<vmem>>, vector<8x256xf32>
    %cst_26 = arith.constant dense<0.000000e+00> : vector<16x256xf32>
    %34 = tpu.matmul %32, %33, %cst_26 {dimension_numbers = #tpu.dot_dimension_numbers<[1], [0], [0], [1], [0, 0, 1, 1], [], []>} : vector<16x8xf32>, vector<8x256xf32>, vector<16x256xf32> -> vector<16x256xf32>
    %35 = arith.mulf %0, %34 : vector<16x256xf32>
    %c0_27 = arith.constant 0 : index
    %c0_28 = arith.constant 0 : index
    %36 = vector.load %arg12[%c0_27, %c0_28] : memref<256x32xf32, #tpu.memory_space<vmem>>, vector<256x32xf32>
    %cst_29 = arith.constant dense<0.000000e+00> : vector<16x32xf32>
    %37 = tpu.matmul %35, %36, %cst_29 {dimension_numbers = #tpu.dot_dimension_numbers<[1], [0], [0], [1], [0, 0, 1, 1], [], []>} : vector<16x256xf32>, vector<256x32xf32>, vector<16x32xf32> -> vector<16x32xf32>
    %c0_30 = arith.constant 0 : index
    %c0_31 = arith.constant 0 : index
    %38 = vector.load %arg13[%c0_30, %c0_31] : memref<1x32xf32, #tpu.memory_space<vmem>>, vector<1x32xf32>
    %39 = vector.broadcast %38 : vector<1x32xf32> to vector<16x32xf32>
    %40 = arith.addf %37, %39 : vector<16x32xf32>
    %41 = arith.mulf %40, %1 : vector<16x32xf32>
    %42 = tpu.concatenate %40, %1, %41 in 1 : vector<16x32xf32>, vector<16x32xf32>, vector<16x32xf32> -> vector<16x96xf32>
    %c0_32 = arith.constant 0 : index
    %c0_33 = arith.constant 0 : index
    %43 = vector.load %arg14[%c0_32, %c0_33] : memref<96x64xf32, #tpu.memory_space<vmem>>, vector<96x64xf32>
    %cst_34 = arith.constant dense<0.000000e+00> : vector<16x64xf32>
    %44 = tpu.matmul %42, %43, %cst_34 {dimension_numbers = #tpu.dot_dimension_numbers<[1], [0], [0], [1], [0, 0, 1, 1], [], []>} : vector<16x96xf32>, vector<96x64xf32>, vector<16x64xf32> -> vector<16x64xf32>
    %c0_35 = arith.constant 0 : index
    %c0_36 = arith.constant 0 : index
    %45 = vector.load %arg15[%c0_35, %c0_36] : memref<1x64xf32, #tpu.memory_space<vmem>>, vector<1x64xf32>
    %46 = vector.broadcast %45 : vector<1x64xf32> to vector<16x64xf32>
    %47 = arith.addf %44, %46 : vector<16x64xf32>
    %48 = arith.negf %47 : vector<16x64xf32>
    %49 = math.exp %48 : vector<16x64xf32>
    %cst_37 = arith.constant 1.000000e+00 : f32
    %50 = vector.broadcast %cst_37 : f32 to vector<16x64xf32>
    %51 = arith.addf %50, %49 : vector<16x64xf32>
    %52 = arith.divf %50, %51 : vector<16x64xf32>
    %c0_38 = arith.constant 0 : index
    %c0_39 = arith.constant 0 : index
    %53 = vector.load %arg16[%c0_38, %c0_39] : memref<64x32xf32, #tpu.memory_space<vmem>>, vector<64x32xf32>
    %cst_40 = arith.constant dense<0.000000e+00> : vector<16x32xf32>
    %54 = tpu.matmul %52, %53, %cst_40 {dimension_numbers = #tpu.dot_dimension_numbers<[1], [0], [0], [1], [0, 0, 1, 1], [], []>} : vector<16x64xf32>, vector<64x32xf32>, vector<16x32xf32> -> vector<16x32xf32>
    %c0_41 = arith.constant 0 : index
    %c0_42 = arith.constant 0 : index
    %55 = vector.load %arg17[%c0_41, %c0_42] : memref<1x32xf32, #tpu.memory_space<vmem>>, vector<1x32xf32>
    %56 = vector.broadcast %55 : vector<1x32xf32> to vector<16x32xf32>
    %57 = arith.addf %54, %56 : vector<16x32xf32>
    %58 = arith.negf %57 : vector<16x32xf32>
    %59 = math.exp %58 : vector<16x32xf32>
    %cst_43 = arith.constant 1.000000e+00 : f32
    %60 = vector.broadcast %cst_43 : f32 to vector<16x32xf32>
    %61 = arith.addf %60, %59 : vector<16x32xf32>
    %62 = arith.divf %60, %61 : vector<16x32xf32>
    %c0_44 = arith.constant 0 : index
    %c0_45 = arith.constant 0 : index
    %63 = vector.load %arg18[%c0_44, %c0_45] : memref<1x32xf32, #tpu.memory_space<vmem>>, vector<1x32xf32>
    %cst_46 = arith.constant dense<0.000000e+00> : vector<1x16xf32>
    %64 = tpu.matmul %63, %62, %cst_46 {dimension_numbers = #tpu.dot_dimension_numbers<[1], [1], [0], [0], [0, 0, 1, 0], [], []>} : vector<1x32xf32>, vector<16x32xf32>, vector<1x16xf32> -> vector<1x16xf32>
    %c0_47 = arith.constant 0 : index
    %c0_48 = arith.constant 0 : index
    %65 = vector.load %arg19[%c0_47, %c0_48] : memref<1x1xf32, #tpu.memory_space<vmem>>, vector<1x1xf32>
    %66 = vector.broadcast %65 : vector<1x1xf32> to vector<1x16xf32>
    %67 = arith.addf %64, %66 : vector<1x16xf32>
    %c0_49 = arith.constant 0 : index
    %c0_50 = arith.constant 0 : index
    %c0_51 = arith.constant 0 : index
    %68 = vector.load %arg20[%c0_49, %c0_50, %c0_51] : memref<1x1x16xf32, #tpu.memory_space<vmem>>, vector<1x1x16xf32>
    %69 = vector.shape_cast %68 : vector<1x1x16xf32> to vector<1x16xf32>
    %70 = vector.shape_cast %67 : vector<1x16xf32> to vector<1x1x16xf32>
    tpu.vector_store %arg20[%c0_49, %c0_50, %c0_51], %70 {strides = array<i32>} : memref<1x1x16xf32, #tpu.memory_space<vmem>>, vector<1x1x16xf32>,
    return
  }
  func.func @transform_0(%arg0: i32) -> (i32, i32) {
    %c0_i32 = arith.constant 0 : i32
    %c0_i32_0 = arith.constant 0 : i32
    return %arg0, %c0_i32 : i32, i32
  }
  func.func @transform_1(%arg0: i32) -> (i32, i32) {
    %c0_i32 = arith.constant 0 : i32
    %c0_i32_0 = arith.constant 0 : i32
    return %arg0, %c0_i32 : i32, i32
  }
  func.func @transform_2(%arg0: i32) -> (i32, i32) {
    %c0_i32 = arith.constant 0 : i32
    %c0_i32_0 = arith.constant 0 : i32
    return %arg0, %c0_i32 : i32, i32
  }
  func.func @transform_3(%arg0: i32) -> (i32, i32) {
    %c0_i32 = arith.constant 0 : i32
    %c0_i32_0 = arith.constant 0 : i32
    %c0_i32_1 = arith.constant 0 : i32
    return %c0_i32, %c0_i32_0 : i32, i32
  }
  func.func @transform_4(%arg0: i32) -> (i32, i32) {
    %c0_i32 = arith.constant 0 : i32
    %c0_i32_0 = arith.constant 0 : i32
    %c0_i32_1 = arith.constant 0 : i32
    return %c0_i32, %c0_i32_0 : i32, i32
  }
  func.func @transform_5(%arg0: i32) -> (i32, i32) {
    %c0_i32 = arith.constant 0 : i32
    %c0_i32_0 = arith.constant 0 : i32
    %c0_i32_1 = arith.constant 0 : i32
    return %c0_i32, %c0_i32_0 : i32, i32
  }
  func.func @transform_6(%arg0: i32) -> (i32, i32) {
    %c0_i32 = arith.constant 0 : i32
    %c0_i32_0 = arith.constant 0 : i32
    %c0_i32_1 = arith.constant 0 : i32
    return %c0_i32, %c0_i32_0 : i32, i32
  }
  func.func @transform_7(%arg0: i32) -> (i32, i32) {
    %c0_i32 = arith.constant 0 : i32
    %c0_i32_0 = arith.constant 0 : i32
    %c0_i32_1 = arith.constant 0 : i32
    return %c0_i32, %c0_i32_0 : i32, i32
  }
  func.func @transform_8(%arg0: i32) -> (i32, i32) {
    %c0_i32 = arith.constant 0 : i32
    %c0_i32_0 = arith.constant 0 : i32
    %c0_i32_1 = arith.constant 0 : i32
    return %c0_i32, %c0_i32_0 : i32, i32
  }
  func.func @transform_9(%arg0: i32) -> (i32, i32) {
    %c0_i32 = arith.constant 0 : i32
    %c0_i32_0 = arith.constant 0 : i32
    %c0_i32_1 = arith.constant 0 : i32
    return %c0_i32, %c0_i32_0 : i32, i32
  }
  func.func @transform_10(%arg0: i32) -> (i32, i32) {
    %c0_i32 = arith.constant 0 : i32
    %c0_i32_0 = arith.constant 0 : i32
    %c0_i32_1 = arith.constant 0 : i32
    return %c0_i32, %c0_i32_0 : i32, i32
  }
  func.func @transform_11(%arg0: i32) -> (i32, i32) {
    %c0_i32 = arith.constant 0 : i32
    %c0_i32_0 = arith.constant 0 : i32
    %c0_i32_1 = arith.constant 0 : i32
    return %c0_i32, %c0_i32_0 : i32, i32
  }
  func.func @transform_12(%arg0: i32) -> (i32, i32) {
    %c0_i32 = arith.constant 0 : i32
    %c0_i32_0 = arith.constant 0 : i32
    %c0_i32_1 = arith.constant 0 : i32
    return %c0_i32, %c0_i32_0 : i32, i32
  }
  func.func @transform_13(%arg0: i32) -> (i32, i32) {
    %c0_i32 = arith.constant 0 : i32
    %c0_i32_0 = arith.constant 0 : i32
    %c0_i32_1 = arith.constant 0 : i32
    return %c0_i32, %c0_i32_0 : i32, i32
  }
  func.func @transform_14(%arg0: i32) -> (i32, i32) {
    %c0_i32 = arith.constant 0 : i32
    %c0_i32_0 = arith.constant 0 : i32
    %c0_i32_1 = arith.constant 0 : i32
    return %c0_i32, %c0_i32_0 : i32, i32
  }
  func.func @transform_15(%arg0: i32) -> (i32, i32) {
    %c0_i32 = arith.constant 0 : i32
    %c0_i32_0 = arith.constant 0 : i32
    %c0_i32_1 = arith.constant 0 : i32
    return %c0_i32, %c0_i32_0 : i32, i32
  }
  func.func @transform_16(%arg0: i32) -> (i32, i32) {
    %c0_i32 = arith.constant 0 : i32
    %c0_i32_0 = arith.constant 0 : i32
    %c0_i32_1 = arith.constant 0 : i32
    return %c0_i32, %c0_i32_0 : i32, i32
  }
  func.func @transform_17(%arg0: i32) -> (i32, i32) {
    %c0_i32 = arith.constant 0 : i32
    %c0_i32_0 = arith.constant 0 : i32
    %c0_i32_1 = arith.constant 0 : i32
    return %c0_i32, %c0_i32_0 : i32, i32
  }
  func.func @transform_18(%arg0: i32) -> (i32, i32) {
    %c0_i32 = arith.constant 0 : i32
    %c0_i32_0 = arith.constant 0 : i32
    %c0_i32_1 = arith.constant 0 : i32
    return %c0_i32, %c0_i32_0 : i32, i32
  }
  func.func @transform_19(%arg0: i32) -> (i32, i32, i32) {
    %c0_i32 = arith.constant 0 : i32
    %c0_i32_0 = arith.constant 0 : i32
    %c0_i32_1 = arith.constant 0 : i32
    return %arg0, %c0_i32, %c0_i32_0 : i32, i32, i32
  }
}

</mosaic_0001>

<bundles_post_ra>
// kernel: tpu_custom_call.1
= control target key start
LH: loop header
LB: loop body
LE: loop exit
PB: predicated region body
PF: predicated region fallthrough
CT: control target
= control target key end

     0   :  { %s3150_s0 = inlined_call_operand.vmem [shape: f32[64,256], index: 0, kind: input, shape index: {}]   ;;  %s3151_s1 = inlined_call_operand.vmem [shape: f32[64,32], index: 1, kind: input, shape index: {}]   ;;  %s3152_s2 = inlined_call_operand.vmem [shape: f32[64,8], index: 2, kind: input, shape index: {}]   ;;  %s3153_s3 = inlined_call_operand.hbm [shape: f32[544,256], index: 3, kind: input, shape index: {}]   ;;  %s3154_s4 = inlined_call_operand.vmem [shape: f32[1,256], index: 4, kind: input, shape index: {}]   ;;  %s3155_s5 = inlined_call_operand.vmem [shape: f32[256,128], index: 5, kind: input, shape index: {}]   ;;  %s3156_s6 = inlined_call_operand.vmem [shape: f32[1,128], index: 6, kind: input, shape index: {}]   ;;  %s3157_s7 = inlined_call_operand.vmem [shape: f32[128,8], index: 7, kind: input, shape index: {}]   ;;  %s3158_s8 = inlined_call_operand.<no memory space> [shape: f32[1,1], index: 8, kind: input, shape index: {}]   ;;  %s3159_s9 = inlined_call_operand.vmem [shape: f32[32,256], index: 9, kind: input, shape index: {}]   ;;  %s3160_s10 = inlined_call_operand.vmem [shape: f32[8,256], index: 10, kind: input, shape index: {}]   ;;  %s3161_s11 = inlined_call_operand.vmem [shape: f32[256,32], index: 11, kind: input, shape index: {}]   ;;  %s3162_s12 = inlined_call_operand.vmem [shape: f32[1,32], index: 12, kind: input, shape index: {}]   ;;  %s3163_s13 = inlined_call_operand.vmem [shape: f32[96,64], index: 13, kind: input, shape index: {}]   ;;  %s3164_s14 = inlined_call_operand.vmem [shape: f32[1,64], index: 14, kind: input, shape index: {}]   ;;  %s3165_s15 = inlined_call_operand.vmem [shape: f32[64,32], index: 15, kind: input, shape index: {}]   ;;  %s3166_s16 = inlined_call_operand.vmem [shape: f32[1,32], index: 16, kind: input, shape index: {}]   ;;  %s3167_s17 = inlined_call_operand.vmem [shape: f32[1,32], index: 17, kind: input, shape index: {}]   ;;  %s3168_s19 = inlined_call_operand.hbm [shape: f32[4,1,16], index: 19, kind: output, shape index: {}]   ;;  %s3169_s18 = inlined_call_operand.<no memory space> [shape: f32[1,1], index: 18, kind: input, shape index: {}]  }
   0x1   :  { %3175 = sst [smem:[#allocation14_spill]] %s3150_s0  ;;  %v24_v0 = vstv %s3158_s8  ;;  %v26_v1 = vstv %s3169_s18 }
   0x2   :  { %3176 = sst [smem:[#allocation15_spill]] %s3151_s1  ;;  %25 = vst [vmem:[#allocation2] sm:$0x1] %v24_v0  ;;  %27 = vst [vmem:[#allocation3] sm:$0x1] %v26_v1 }
   0x3   :  { %3177 = sst [smem:[#allocation16_spill]] %s3152_s2 }
   0x4   :  { %3178 = sst [smem:[#allocation17_spill]] %s3153_s3 }
   0x5   :  { %28 = vsyncpa [#allocation5], 0 }
   0x6   :  { %29 = vsyncpa [#allocation6], 0 }
   0x7   :  { %31 = vsyncpa [#allocation6 + $0x1], 0  ;;  %s2608_s1 = smov 0   ;;  %s2610_s22 = smov 0  }
   0x8   :  { %s2612_s2 = smov 0   ;;  %s2614_s23 = smov 0  }
   0x9 LB: > { %3179 = sst [smem:[#allocation10_spill]] %s2487_s2  ;;  %s2629_s8 = sadd.s32 4294967295, %s2491_s23   ;;  %s2491_s23 = sphi %s2614_s23, %s3193_s23   ;;  %s2487_s2 = sphi %s2612_s2, %s3195_s2   ;;  %s2483_s22 = sphi %s2610_s22, %s3197_s22   ;;  %s2479_s1 = sphi %s2608_s1, %s3196_s1  }
   0xa   : > { %s2046_s18 = sadd.s32 4294967294, %s2491_s23   ;;  %s2633_s24 = sadd.s32 1, %s2491_s23  }
   0xb   : > { %3180 = sst [smem:[#allocation11_spill]] %s2633_s24  ;;  %s458_s25 = sadd.s32 1, %s2487_s2 }
   0xc   : > { %s455_s3 = ssub.s32 %s2491_s23, %s2633_s24  ;;  %p468_p0 = scmp.ne.s32.totalorder %s2487_s2, %s2483_s22 }
   0xd   : > { %p456_p1 = scmp.eq.s32.totalorder %s455_s3, 0  ;;  %p469_p2 = scmp.eq.s32.totalorder %s2629_s8, 3 }
   0xe   : > { %p474_p3 = scmp.ne.s32.totalorder %s2483_s22, %s2479_s1  ;;  %p475_p4 = scmp.eq.s32.totalorder %s2046_s18, 3 }
   0xf   : > { %s2644_s26 = scalar_select %p456_p1, %s2487_s2, %s458_s25  }
  0x10   : > { %p2646_p5 = por %p469_p2, %p468_p0  ;;  %p2650_p6 = por %p475_p4, %p474_p3 }
  0x11   : > { %3181 = sst [smem:[#allocation12_spill]] %s2644_s26  ;;  %p2047_p7 = scmp.ge.s32.totalorder %s2491_s23, 1 }
  0x12   : > { %s3183_s28 = scalar_select %p2650_p6, 1, 0 }
  0x13   : > { %p482_p8 = scmp.lt.s32.totalorder %s2491_s23, 5  ;;  %p2314_p9 = scmp.eq.s32.totalorder %s2629_s8, 0 }
  0x14   : > { %3184 = sst [smem:[#allocation13_spill]] %s3183_s28  ;;  %s2493_s0 = smov [#allocation4]  }
  0x15   : > { %p2657_p10 = pnand %p2047_p7, %p482_p8  ;;  %s494_s30 = sshll.u32 %s2493_s0, 4  ;;  %s495_s30 = int_to_ptr.vmem [resolvable:$true] %s494_s30 }
  0x16   : > { %s2412_s20 = scalar_lea.vmem %s495_s30, 17408  ;;  %p2420_p3 = scmp.lt.s32.totalorder %s495_s30, %s495_s30 }
  0x17   : > { %p2306_p11 = pneg %p2657_p10  ;;  %p2413_p0 = scmp.ne.s32.totalorder %s495_s30, %s2412_s20 }
  0x18   : > { %p2421_p4 = scmp.lt.s32.totalorder %s2412_s20, %s2412_s20 }
  0x19   : > { %p2307_p12 = pnand %p2314_p9, %p2306_p11 }
  0x1a   : > { %p2422_p6 = por %p2421_p4, %p2420_p3 }
  0x1b   : > { %p2403_p13 = pneg %p2307_p12 }
  0x1d   : > { %p2415_p1 = pnand %p2413_p0, %p2403_p13 }
  0x1f   : > { %p2416_p2 = pneg %p2415_p1 }
  0x21   : > { %p2423_p7 = pnand %p2422_p6, %p2416_p2 }
  0x23   : > { %2426 = shalt.err (!%p2423_p7)
}
  0x24   : > { %s2494_s21 = smov 256   ;;  %s2495_s18 = smov 16  }
  0x25   : > { %s3186_s0 = sld [smem:[#allocation17_spill]] }
  0x27   : > { %583 = sbr.rel (%p2657_p10) target bundleno = 2109 (0x83d), region = 96 }
  0x2b   : > { %2309 = dma.hbm_to_vmem [thread:$0]  (!%p2307_p12), %s3186_s0, 17408, %s495_s30, [#allocation5], %s2494_s21, %s2494_s21, %s2495_s18  }
  0x2c   : > { %2470 = dma.done.wait (%p2314_p9), [#allocation5], 17408  }
  0x2d   : > { %2472 = vsyncadd (%p2314_p9), [#allocation5], 4294949888  ;;  %s2052_s20 = sshll.u32 %s2629_s8, 1  ;;  %v2496_v2 = vmov 0.0   ;;  %v683_v3 = vld [vmem:[%s3159_s9 + $0x38] sm:$0xff]  ;;  %v682_v4 = vld [vmem:[%s3159_s9 + $0x30] sm:$0xff] }
  0x2e   : > { %755 = vmatprep.mubr.f32.mxu0 %v2496_v2  ;;  %p650_p6 = scmp.lt.s32.totalorder %s2052_s20, 7  ;;  %v681_v5 = vld [vmem:[%s3159_s9 + $0x28] sm:$0xff]  ;;  %715 = vmatprep.subr.mxu0 %v683_v3  ;;  %v680_v6 = vld [vmem:[%s3159_s9 + $0x20] sm:$0xff]  ;;  %v679_v7 = vld [vmem:[%s3159_s9 + $0x18] sm:$0xff]  ;;  %s3187_s21 = sld [smem:[#allocation15_spill]]  ;;  %vm684_vm0 = vcmask 261120  }
  0x2f   : > { %716 = vmatpush1.msra.mxu0 %v682_v4  ;;  %v678_v8 = vld [vmem:[%s3159_s9 + $0x10] sm:$0xff]  ;;  %v803_v9 = vld [vmem:[#allocation4 + $0xf8] sm:$0xff]  ;;  %v677_v11 = vld [vmem:[%s3159_s9 + $0x8] sm:$0xff]  ;;  %s3188_s30 = sld [smem:[#allocation14_spill]]  ;;  %vm1406_vm1 = vcmask 64512   ;;  %vm1626_vm2 = vcmask 523264  }
  0x30   : > { %s3199_s20 = smov (!%p650_p6, %s2052_s20), 7  ;;  %717 = vmatprep.subr.mxu0 %v681_v5  ;;  %v802_v10 = vld [vmem:[#allocation4 + $0xf0] sm:$0xff]  ;;  %920 = vmatprep.subr.mxu1 %v803_v9  ;;  %v801_v12 = vld [vmem:[#allocation4 + $0xe8] sm:$0xff]  ;;  %v800_v13 = vld [vmem:[#allocation4 + $0xe0] sm:$0xff]  ;;  %vm1648_vm3 = vcmask 785408   ;;  %vm2500_vm4 = vmmov 0  }
  0x31   : > { %s3174_s3 = sshll.u32 %s3199_s20, 3  ;;  %718 = vmatpush1.msra.mxu0 %v680_v6  ;;  %v676_v14 = vld [vmem:[%s3159_s9] sm:$0xff]  ;;  %921 = vmatpush1.msra.mxu1 %v802_v10  ;;  %v798_v17 = vld [vmem:[#allocation4 + $0xd0] sm:$0xff]  ;;  %v797_v18 = vld [vmem:[#allocation4 + $0xc8] sm:$0xff]  ;;  %s2090_s26 = sshll.u32 %s3199_s20, 4  ;;  %vm1940_vm5 = vcmask 122880  }
  0x32   : > { %719 = vmatprep.subr.mxu0 %v679_v7  ;;  %v799_v15 = vld [vmem:[#allocation4 + $0xd8] sm:$0xff]  ;;  %922 = vmatprep.subr.mxu1 %v801_v12  ;;  %v796_v19 = vld [vmem:[#allocation4 + $0xc0] sm:$0xff]  ;;  %v866_v22 = vld [vmem:[#allocation4 + $0x2f0] sm:$0xff]  ;;  %s3189_s29 = sshll.u32 %s3199_s20, 3  ;;  %s2498_s20 = smov 32  }
  0x33   : > { %720 = vmatpush1.msra.mxu0 %v678_v8  ;;  %923 = vmatpush1.msra.mxu1 %v800_v13  ;;  %v867_v20 = vld [vmem:[#allocation4 + $0x2f8] sm:$0xff]  ;;  %v794_v24 = vld [vmem:[#allocation4 + $0xb0] sm:$0xff]  ;;  %v793_v25 = vld [vmem:[#allocation4 + $0xa8] sm:$0xff]  ;;  %s647_s28 = sand.u32 1, %s2483_s22  }
  0x34   : > { %s2702_s18 = scalar_lea.vmem %s3187_s21, %s3174_s3  ;;  %721 = vmatprep.subr.mxu0 %v677_v11  ;;  %924 = vmatprep.subr.mxu1 %v799_v15  ;;  %v795_v21 = vld [vmem:[#allocation4 + $0xb8] sm:$0xff]  ;;  %v865_v26 = vld [vmem:[#allocation4 + $0x2e8] sm:$0xff]  ;;  %v792_v27 = vld [vmem:[#allocation4 + $0xa0] sm:$0xff] }
  0x35   : > { %v2711_v16 = vld [vmem:[%s2702_s18] sm:$0xff]  ;;  %722 = vmatpush1.msra.mxu0 %v676_v14  ;;  %925 = vmatpush1.msra.mxu1 %v798_v17  ;;  %v2717_v23 = vld [vmem:[%s2702_s18 + $0x8] sm:$0xff]  ;;  %v790_v31 = vld [vmem:[#allocation4 + $0x90] sm:$0xff]  ;;  %s2725_s21 = scalar_lea.vmem %s3188_s30, %s2090_s26  ;;  %s648_s26 = scalar_lea.vmem [#allocation7], %s647_s28 }
  0x36   : > { %2059 = vmatmul.mubr.msk.f32.vlgmr.msra.gmra.mxu0 %vm684_vm0, %v2711_v16  ;;  %926 = vmatprep.subr.mxu1 %v797_v18  ;;  %v864_v28 = vld [vmem:[#allocation4 + $0x2e0] sm:$0xff]  ;;  %v791_v29 = vld [vmem:[#allocation4 + $0x98] sm:$0xff]  ;;  %v862_v32 = vld [vmem:[#allocation4 + $0x2d0] sm:$0xff]  ;;  %s1955_s25 = sshll.u32 %s648_s26, 4  ;;  %s1956_s25 = int_to_ptr.vmem [resolvable:$true] %s1955_s25 }
  0x37   : > { %761 = vmatprep.mubr.f32.mxu0 %v2496_v2  ;;  %927 = vmatpush1.msra.mxu1 %v796_v19  ;;  %v863_v30 = vld [vmem:[#allocation4 + $0x2d8] sm:$0xff]  ;;  %v789_v33 = vld [vmem:[#allocation4 + $0x88] sm:$0xff]  ;;  %v788_v35 = vld [vmem:[#allocation4 + $0x80] sm:$0xff] }
  0x38   : > { %997 = vmatprep.subr.mxu0 %v867_v20  ;;  %928 = vmatprep.subr.mxu1 %v795_v21  ;;  %v861_v34 = vld [vmem:[#allocation4 + $0x2c8] sm:$0xff]  ;;  %v860_v36 = vld [vmem:[#allocation4 + $0x2c0] sm:$0xff]  ;;  %v787_v37 = vld [vmem:[#allocation4 + $0x78] sm:$0xff] }
  0x39   : > { %998 = vmatpush1.msra.mxu0 %v866_v22  ;;  %929 = vmatpush1.msra.mxu1 %v794_v24  ;;  %v859_v38 = vld [vmem:[#allocation4 + $0x2b8] sm:$0xff]  ;;  %v786_v39 = vld [vmem:[#allocation4 + $0x70] sm:$0xff]  ;;  %v785_v41 = vld [vmem:[#allocation4 + $0x68] sm:$0xff] }
  0x3a   : > { %2060 = vmatmul.mubr.msk.f32.gmra.mxu0 %vm684_vm0, %v2717_v23  ;;  %930 = vmatprep.subr.mxu1 %v793_v25  ;;  %v858_v40 = vld [vmem:[#allocation4 + $0x2b0] sm:$0xff]  ;;  %v857_v42 = vld [vmem:[#allocation4 + $0x2a8] sm:$0xff]  ;;  %v784_v43 = vld [vmem:[#allocation4 + $0x60] sm:$0xff] }
  0x3b   : > { %999 = vmatprep.subr.mxu0 %v865_v26  ;;  %931 = vmatpush1.msra.mxu1 %v792_v27  ;;  %v856_v44 = vld [vmem:[#allocation4 + $0x2a0] sm:$0xff]  ;;  %v783_v45 = vld [vmem:[#allocation4 + $0x58] sm:$0xff]  ;;  %v782_v47 = vld [vmem:[#allocation4 + $0x50] sm:$0xff] }
  0x3c   : > { %1000 = vmatpush1.msra.mxu0 %v864_v28  ;;  %932 = vmatprep.subr.mxu1 %v791_v29  ;;  %v855_v46 = vld [vmem:[#allocation4 + $0x298] sm:$0xff]  ;;  %v854_v48 = vld [vmem:[#allocation4 + $0x290] sm:$0xff]  ;;  %v781_v49 = vld [vmem:[#allocation4 + $0x48] sm:$0xff] }
  0x3d   : > { %1001 = vmatprep.subr.mxu0 %v863_v30  ;;  %933 = vmatpush1.msra.mxu1 %v790_v31  ;;  %v853_v50 = vld [vmem:[#allocation4 + $0x288] sm:$0xff]  ;;  %v780_v51 = vld [vmem:[#allocation4 + $0x40] sm:$0xff]  ;;  %v779_v53 = vld [vmem:[#allocation4 + $0x38] sm:$0xff] }
  0x3e   : > { %1002 = vmatpush1.msra.mxu0 %v862_v32  ;;  %934 = vmatprep.subr.mxu1 %v789_v33  ;;  %v852_v52 = vld [vmem:[#allocation4 + $0x280] sm:$0xff]  ;;  %v851_v54 = vld [vmem:[#allocation4 + $0x278] sm:$0xff]  ;;  %v778_v55 = vld [vmem:[#allocation4 + $0x30] sm:$0xff] }
  0x3f   : > { %1003 = vmatprep.subr.mxu0 %v861_v34  ;;  %935 = vmatpush1.msra.mxu1 %v788_v35  ;;  %v850_v56 = vld [vmem:[#allocation4 + $0x270] sm:$0xff]  ;;  %v777_v57 = vld [vmem:[#allocation4 + $0x28] sm:$0xff]  ;;  %v776_v59 = vld [vmem:[#allocation4 + $0x20] sm:$0xff] }
  0x40   : > { %1004 = vmatpush1.msra.mxu0 %v860_v36  ;;  %936 = vmatprep.subr.mxu1 %v787_v37  ;;  %v849_v58 = vld [vmem:[#allocation4 + $0x268] sm:$0xff]  ;;  %v848_v60 = vld [vmem:[#allocation4 + $0x260] sm:$0xff]  ;;  %v775_v61 = vld [vmem:[#allocation4 + $0x18] sm:$0xff] }
  0x41   : > { %1005 = vmatprep.subr.mxu0 %v859_v38  ;;  %937 = vmatpush1.msra.mxu1 %v786_v39  ;;  %v847_v62 = vld [vmem:[#allocation4 + $0x258] sm:$0xff]  ;;  %v774_v63 = vld [vmem:[#allocation4 + $0x10] sm:$0xff]  ;;  %v773_v1 = vld [vmem:[#allocation4 + $0x8] sm:$0xff] }
  0x42   : > { %1006 = vmatpush1.msra.mxu0 %v858_v40  ;;  %938 = vmatprep.subr.mxu1 %v785_v41  ;;  %v846_v0 = vld [vmem:[#allocation4 + $0x250] sm:$0xff]  ;;  %v845_v3 = vld [vmem:[#allocation4 + $0x248] sm:$0xff]  ;;  %v772_v4 = vld [vmem:[#allocation4] sm:$0xff] }
  0x43   : > { %1007 = vmatprep.subr.mxu0 %v857_v42  ;;  %939 = vmatpush1.msra.mxu1 %v784_v43  ;;  %v844_v5 = vld [vmem:[#allocation4 + $0x240] sm:$0xff]  ;;  %v835_v6 = vld [vmem:[#allocation4 + $0x1f8] sm:$0xff]  ;;  %v834_v8 = vld [vmem:[#allocation4 + $0x1f0] sm:$0xff] }
  0x44   : > { %1008 = vmatpush1.msra.mxu0 %v856_v44  ;;  %940 = vmatprep.subr.mxu1 %v783_v45  ;;  %v843_v7 = vld [vmem:[#allocation4 + $0x238] sm:$0xff]  ;;  %v842_v9 = vld [vmem:[#allocation4 + $0x230] sm:$0xff]  ;;  %v833_v10 = vld [vmem:[#allocation4 + $0x1e8] sm:$0xff] }
  0x45   : > { %1009 = vmatprep.subr.mxu0 %v855_v46  ;;  %941 = vmatpush1.msra.mxu1 %v782_v47  ;;  %v841_v11 = vld [vmem:[#allocation4 + $0x228] sm:$0xff]  ;;  %v832_v12 = vld [vmem:[#allocation4 + $0x1e0] sm:$0xff]  ;;  %v831_v14 = vld [vmem:[#allocation4 + $0x1d8] sm:$0xff] }
  0x46   : > { %1010 = vmatpush1.msra.mxu0 %v854_v48  ;;  %942 = vmatprep.subr.mxu1 %v781_v49  ;;  %v840_v13 = vld [vmem:[#allocation4 + $0x220] sm:$0xff]  ;;  %v839_v15 = vld [vmem:[#allocation4 + $0x218] sm:$0xff]  ;;  %v830_v17 = vld [vmem:[#allocation4 + $0x1d0] sm:$0xff] }
  0x47   : > { %1011 = vmatprep.subr.mxu0 %v853_v50  ;;  %943 = vmatpush1.msra.mxu1 %v780_v51  ;;  %v838_v18 = vld [vmem:[#allocation4 + $0x210] sm:$0xff]  ;;  %v829_v19 = vld [vmem:[#allocation4 + $0x1c8] sm:$0xff]  ;;  %v828_v21 = vld [vmem:[#allocation4 + $0x1c0] sm:$0xff] }
  0x48   : > { %1012 = vmatpush1.msra.mxu0 %v852_v52  ;;  %944 = vmatprep.subr.mxu1 %v779_v53  ;;  %v837_v20 = vld [vmem:[#allocation4 + $0x208] sm:$0xff]  ;;  %v836_v22 = vld [vmem:[#allocation4 + $0x200] sm:$0xff]  ;;  %v827_v24 = vld [vmem:[#allocation4 + $0x1b8] sm:$0xff] }
  0x49   : > { %1013 = vmatprep.subr.mxu0 %v851_v54  ;;  %945 = vmatpush1.msra.mxu1 %v778_v55  ;;  %v899_v25 = vld [vmem:[#allocation4 + $0x3f8] sm:$0xff]  ;;  %v826_v26 = vld [vmem:[#allocation4 + $0x1b0] sm:$0xff]  ;;  %v825_v28 = vld [vmem:[#allocation4 + $0x1a8] sm:$0xff] }
  0x4a   : > { %1014 = vmatpush1.msra.mxu0 %v850_v56  ;;  %946 = vmatprep.subr.mxu1 %v777_v57  ;;  %v898_v27 = vld [vmem:[#allocation4 + $0x3f0] sm:$0xff]  ;;  %v897_v29 = vld [vmem:[#allocation4 + $0x3e8] sm:$0xff]  ;;  %v824_v30 = vld [vmem:[#allocation4 + $0x1a0] sm:$0xff] }
  0x4b   : > { %1015 = vmatprep.subr.mxu0 %v849_v58  ;;  %947 = vmatpush1.msra.mxu1 %v776_v59  ;;  %v896_v31 = vld [vmem:[#allocation4 + $0x3e0] sm:$0xff]  ;;  %v823_v32 = vld [vmem:[#allocation4 + $0x198] sm:$0xff]  ;;  %v822_v34 = vld [vmem:[#allocation4 + $0x190] sm:$0xff] }
  0x4c   : > { %1016 = vmatpush1.msra.mxu0 %v848_v60  ;;  %948 = vmatprep.subr.mxu1 %v775_v61  ;;  %v895_v33 = vld [vmem:[#allocation4 + $0x3d8] sm:$0xff]  ;;  %v894_v35 = vld [vmem:[#allocation4 + $0x3d0] sm:$0xff]  ;;  %v821_v36 = vld [vmem:[#allocation4 + $0x188] sm:$0xff] }
  0x4d   : > { %1017 = vmatprep.subr.mxu0 %v847_v62  ;;  %949 = vmatpush1.msra.mxu1 %v774_v63  ;;  %v893_v37 = vld [vmem:[#allocation4 + $0x3c8] sm:$0xff]  ;;  %v820_v38 = vld [vmem:[#allocation4 + $0x180] sm:$0xff]  ;;  %v819_v40 = vld [vmem:[#allocation4 + $0x178] sm:$0xff] }
  0x4e   : > { %1018 = vmatpush1.msra.mxu0 %v846_v0  ;;  %950 = vmatprep.subr.mxu1 %v773_v1  ;;  %v892_v39 = vld [vmem:[#allocation4 + $0x3c0] sm:$0xff]  ;;  %v891_v41 = vld [vmem:[#allocation4 + $0x3b8] sm:$0xff]  ;;  %v818_v42 = vld [vmem:[#allocation4 + $0x170] sm:$0xff] }
  0x4f   : > { %1019 = vmatprep.subr.mxu0 %v845_v3  ;;  %951 = vmatpush1.msra.mxu1 %v772_v4  ;;  %v890_v43 = vld [vmem:[#allocation4 + $0x3b0] sm:$0xff]  ;;  %v817_v44 = vld [vmem:[#allocation4 + $0x168] sm:$0xff]  ;;  %v816_v46 = vld [vmem:[#allocation4 + $0x160] sm:$0xff] }
  0x50   : > { %1020 = vmatpush1.msra.mxu0 %v844_v5  ;;  %952 = vmatprep.subr.mxu1 %v835_v6  ;;  %v889_v45 = vld [vmem:[#allocation4 + $0x3a8] sm:$0xff]  ;;  %v888_v47 = vld [vmem:[#allocation4 + $0x3a0] sm:$0xff]  ;;  %v815_v48 = vld [vmem:[#allocation4 + $0x158] sm:$0xff] }
  0x51   : > { %1021 = vmatprep.subr.mxu0 %v843_v7  ;;  %953 = vmatpush2.msra.mxu1 %v834_v8  ;;  %v887_v49 = vld [vmem:[#allocation4 + $0x398] sm:$0xff]  ;;  %v814_v50 = vld [vmem:[#allocation4 + $0x150] sm:$0xff]  ;;  %v813_v52 = vld [vmem:[#allocation4 + $0x148] sm:$0xff] }
  0x52   : > { %1022 = vmatpush1.msra.mxu0 %v842_v9  ;;  %954 = vmatprep.subr.mxu1 %v833_v10  ;;  %v886_v51 = vld [vmem:[#allocation4 + $0x390] sm:$0xff]  ;;  %v885_v53 = vld [vmem:[#allocation4 + $0x388] sm:$0xff]  ;;  %v812_v54 = vld [vmem:[#allocation4 + $0x140] sm:$0xff] }
  0x53   : > { %1023 = vmatprep.subr.mxu0 %v841_v11  ;;  %955 = vmatpush2.msra.mxu1 %v832_v12  ;;  %v884_v55 = vld [vmem:[#allocation4 + $0x380] sm:$0xff]  ;;  %v811_v56 = vld [vmem:[#allocation4 + $0x138] sm:$0xff]  ;;  %v810_v58 = vld [vmem:[#allocation4 + $0x130] sm:$0xff] }
  0x54   : > { %1024 = vmatpush1.msra.mxu0 %v840_v13  ;;  %956 = vmatprep.subr.mxu1 %v831_v14  ;;  %v883_v57 = vld [vmem:[#allocation4 + $0x378] sm:$0xff]  ;;  %v882_v59 = vld [vmem:[#allocation4 + $0x370] sm:$0xff]  ;;  %v809_v60 = vld [vmem:[#allocation4 + $0x128] sm:$0xff] }
  0x55   : > { %1025 = vmatprep.subr.mxu0 %v839_v15  ;;  %957 = vmatpush2.msra.mxu1 %v830_v17  ;;  %v881_v61 = vld [vmem:[#allocation4 + $0x368] sm:$0xff]  ;;  %v808_v62 = vld [vmem:[#allocation4 + $0x120] sm:$0xff]  ;;  %v807_v0 = vld [vmem:[#allocation4 + $0x118] sm:$0xff] }
  0x56   : > { %1026 = vmatpush1.msra.mxu0 %v838_v18  ;;  %958 = vmatprep.subr.mxu1 %v829_v19  ;;  %v880_v63 = vld [vmem:[#allocation4 + $0x360] sm:$0xff]  ;;  %v879_v1 = vld [vmem:[#allocation4 + $0x358] sm:$0xff]  ;;  %v806_v3 = vld [vmem:[#allocation4 + $0x110] sm:$0xff] }
  0x57   : > { %1027 = vmatprep.subr.mxu0 %v837_v20  ;;  %959 = vmatpush2.msra.mxu1 %v828_v21  ;;  %v878_v4 = vld [vmem:[#allocation4 + $0x350] sm:$0xff]  ;;  %v805_v5 = vld [vmem:[#allocation4 + $0x108] sm:$0xff]  ;;  %v804_v7 = vld [vmem:[#allocation4 + $0x100] sm:$0xff] }
  0x58   : > { %1028 = vmatpush1.msra.mxu0 %v836_v22  ;;  %960 = vmatprep.subr.mxu1 %v827_v24  ;;  %v877_v6 = vld [vmem:[#allocation4 + $0x348] sm:$0xff]  ;;  %v876_v9 = vld [vmem:[#allocation4 + $0x340] sm:$0xff]  ;;  %v875_v11 = vld [vmem:[#allocation4 + $0x338] sm:$0xff] }
  0x59   : > { %1029 = vmatprep.subr.mxu0 %v899_v25  ;;  %961 = vmatpush2.msra.mxu1 %v826_v26  ;;  %v2728_v8 = vld [vmem:[%s2725_s21 + $0x8] sm:$0xff]  ;;  %v2731_v10 = vld [vmem:[%s2725_s21] sm:$0xff]  ;;  %v874_v13 = vld [vmem:[#allocation4 + $0x330] sm:$0xff] }
  0x5a   : > { %1030 = vmatpush2.msra.mxu0 %v898_v27  ;;  %962 = vmatprep.subr.mxu1 %v825_v28  ;;  %v907_v12 = vld [vmem:[#allocation4 + $0x438] sm:$0xff]  ;;  %v906_v14 = vld [vmem:[#allocation4 + $0x430] sm:$0xff]  ;;  %v873_v15 = vld [vmem:[#allocation4 + $0x328] sm:$0xff] }
  0x5b   : > { %1031 = vmatprep.subr.mxu0 %v897_v29  ;;  %963 = vmatpush2.msra.mxu1 %v824_v30  ;;  %v905_v17 = vld [vmem:[#allocation4 + $0x428] sm:$0xff]  ;;  %v2736_v18 = vld [vmem:[%s2725_s21 + $0x18] sm:$0xff]  ;;  %v872_v19 = vld [vmem:[#allocation4 + $0x320] sm:$0xff] }
  0x5c   : > { %1032 = vmatpush2.msra.mxu0 %v896_v31  ;;  %964 = vmatprep.subr.mxu1 %v823_v32  ;;  %v904_v20 = vld [vmem:[#allocation4 + $0x420] sm:$0xff]  ;;  %v2740_v21 = vld [vmem:[%s2725_s21 + $0x10] sm:$0xff]  ;;  %v871_v22 = vld [vmem:[#allocation4 + $0x318] sm:$0xff]  ;;  %s3190_s21 = sld [smem:[#allocation16_spill]] }
  0x5d   : > { %1033 = vmatprep.subr.mxu0 %v895_v33  ;;  %965 = vmatpush2.msra.mxu1 %v822_v34  ;;  %v903_v24 = vld [vmem:[#allocation4 + $0x418] sm:$0xff]  ;;  %v870_v25 = vld [vmem:[#allocation4 + $0x310] sm:$0xff]  ;;  %v869_v27 = vld [vmem:[#allocation4 + $0x308] sm:$0xff] }
  0x5e   : > { %1034 = vmatpush2.msra.mxu0 %v894_v35  ;;  %966 = vmatprep.subr.mxu1 %v821_v36  ;;  %v902_v26 = vld [vmem:[#allocation4 + $0x410] sm:$0xff]  ;;  %v901_v28 = vld [vmem:[#allocation4 + $0x408] sm:$0xff]  ;;  %v868_v29 = vld [vmem:[#allocation4 + $0x300] sm:$0xff] }
  0x5f   : > { %1035 = vmatprep.subr.mxu0 %v893_v37  ;;  %967 = vmatpush2.msra.mxu1 %v820_v38  ;;  %v900_v30 = vld [vmem:[#allocation4 + $0x400] sm:$0xff] }
  0x60   : > { %1036 = vmatpush2.msra.mxu0 %v892_v39  ;;  %968 = vmatprep.subr.mxu1 %v819_v40  ;;  %v1205_v39 = vld [vmem:[%s3155_s5 + $0xf0] sm:$0xff] }
  0x61   : > { %1037 = vmatprep.subr.mxu0 %v891_v41  ;;  %969 = vmatpush2.msra.mxu1 %v818_v42  ;;  %v1189_v40 = vld [vmem:[%s3155_s5 + $0x70] sm:$0xff]  ;;  %v1204_v41 = vld [vmem:[%s3155_s5 + $0xe8] sm:$0xff] }
  0x62   : > { %1038 = vmatpush2.msra.mxu0 %v890_v43  ;;  %970 = vmatprep.subr.mxu1 %v817_v44  ;;  %v1188_v42 = vld [vmem:[%s3155_s5 + $0x68] sm:$0xff]  ;;  %v1203_v43 = vld [vmem:[%s3155_s5 + $0xe0] sm:$0xff]  ;;  %s666_s2 = scalar_lea.vmem %s3190_s21, %s3189_s29  ;;  %s1943_s21 = scalar_lea.sflag [#allocation6], %s647_s28 }
  0x63   : > { %1039 = vmatprep.subr.mxu0 %v889_v45  ;;  %971 = vmatpush2.msra.mxu1 %v816_v46  ;;  %v1187_v44 = vld [vmem:[%s3155_s5 + $0x60] sm:$0xff]  ;;  %v1202_v45 = vld [vmem:[%s3155_s5 + $0xd8] sm:$0xff] }
  0x64   : > { %1040 = vmatpush2.msra.mxu0 %v888_v47  ;;  %972 = vmatprep.subr.mxu1 %v815_v48  ;;  %v1186_v46 = vld [vmem:[%s3155_s5 + $0x58] sm:$0xff]  ;;  %v1201_v47 = vld [vmem:[%s3155_s5 + $0xd0] sm:$0xff] }
  0x65   : > { %1041 = vmatprep.subr.mxu0 %v887_v49  ;;  %973 = vmatpush2.msra.mxu1 %v814_v50  ;;  %v1185_v48 = vld [vmem:[%s3155_s5 + $0x50] sm:$0xff]  ;;  %v1200_v49 = vld [vmem:[%s3155_s5 + $0xc8] sm:$0xff] }
  0x66   : > { %1042 = vmatpush2.msra.mxu0 %v886_v51  ;;  %974 = vmatprep.subr.mxu1 %v813_v52  ;;  %v1184_v50 = vld [vmem:[%s3155_s5 + $0x48] sm:$0xff]  ;;  %v1199_v51 = vld [vmem:[%s3155_s5 + $0xc0] sm:$0xff] }
  0x67   : > { %1043 = vmatprep.subr.mxu0 %v885_v53  ;;  %975 = vmatpush2.msra.mxu1 %v812_v54  ;;  %v1183_v52 = vld [vmem:[%s3155_s5 + $0x40] sm:$0xff]  ;;  %v1198_v53 = vld [vmem:[%s3155_s5 + $0xb8] sm:$0xff] }
  0x68   : > { %1044 = vmatpush2.msra.mxu0 %v884_v55  ;;  %976 = vmatprep.subr.mxu1 %v811_v56  ;;  %v1182_v54 = vld [vmem:[%s3155_s5 + $0x38] sm:$0xff]  ;;  %v1197_v55 = vld [vmem:[%s3155_s5 + $0xb0] sm:$0xff] }
  0x69   : > { %1045 = vmatprep.subr.mxu0 %v883_v57  ;;  %977 = vmatpush2.msra.mxu1 %v810_v58  ;;  %v1181_v56 = vld [vmem:[%s3155_s5 + $0x30] sm:$0xff]  ;;  %v1196_v57 = vld [vmem:[%s3155_s5 + $0xa8] sm:$0xff] }
  0x6a   : > { %1046 = vmatpush2.msra.mxu0 %v882_v59  ;;  %978 = vmatprep.subr.mxu1 %v809_v60  ;;  %v1180_v58 = vld [vmem:[%s3155_s5 + $0x28] sm:$0xff]  ;;  %v1195_v59 = vld [vmem:[%s3155_s5 + $0xa0] sm:$0xff] }
  0x6b   : > { %1047 = vmatprep.subr.mxu0 %v881_v61  ;;  %979 = vmatpush2.msra.mxu1 %v808_v62  ;;  %v1179_v60 = vld [vmem:[%s3155_s5 + $0x20] sm:$0xff]  ;;  %v1194_v61 = vld [vmem:[%s3155_s5 + $0x98] sm:$0xff] }
  0x6c   : > { %1048 = vmatpush2.msra.mxu0 %v880_v63  ;;  %980 = vmatprep.subr.mxu1 %v807_v0  ;;  %v1178_v62 = vld [vmem:[%s3155_s5 + $0x18] sm:$0xff]  ;;  %v1193_v63 = vld [vmem:[%s3155_s5 + $0x90] sm:$0xff] }
  0x6d   : > { %1049 = vmatprep.subr.mxu0 %v879_v1  ;;  %981 = vmatpush2.msra.mxu1 %v806_v3  ;;  %v1177_v0 = vld [vmem:[%s3155_s5 + $0x10] sm:$0xff]  ;;  %v1192_v1 = vld [vmem:[%s3155_s5 + $0x88] sm:$0xff] }
  0x6e   : > { %1050 = vmatpush2.msra.mxu0 %v878_v4  ;;  %982 = vmatprep.subr.mxu1 %v805_v5  ;;  %v1176_v3 = vld [vmem:[%s3155_s5 + $0x8] sm:$0xff]  ;;  %v1191_v4 = vld [vmem:[%s3155_s5 + $0x80] sm:$0xff] }
  0x6f   : > { %1051 = vmatprep.subr.mxu0 %v877_v6  ;;  %983 = vmatpush2.msra.mxu1 %v804_v7  ;;  %v1175_v5 = vld [vmem:[%s3155_s5] sm:$0xff]  ;;  %v910_v7 = vlaneseq }
  0x70   : > { %984 = vmatprep.mubr.f32.mxu1 %v2728_v8  ;;  %1052 = vmatpush2.msra.mxu0 %v876_v9 }
  0x71   : > { %985 = vmatmul.mubr.f32.vlgmr.msra.gmra.mxu1 %v2731_v10  ;;  %1053 = vmatprep.subr.mxu0 %v875_v11  ;;  %v2849_v11 = vshrl.u32 %v910_v7, 7  ;;  %v1303_v7 = vld [vmem:[%s3157_s7 + $0x10] sm:$0xff] }
  0x72   : > { %1098 = vmatprep.subr.mxu1 %v907_v12  ;;  %1054 = vmatpush2.msra.mxu0 %v874_v13 }
  0x73   : > { %1099 = vmatpush1.msra.mxu1 %v906_v14  ;;  %1055 = vmatprep.subr.mxu0 %v873_v15  ;;  %v912_v13 = vsub.s32 0, %v2849_v11  ;;  %v908_v14 = vld [vmem:[%s3154_s4] sm:$0x3] }
  0x74   : > { %1100 = vmatprep.subr.mxu1 %v905_v17  ;;  %990 = vmatprep.mubr.f32.mxu1 %v2736_v18  ;;  %v916_v17 = vsub.s32 1, %v2849_v11 }
  0x75   : > { %1056 = vmatpush2.msra.mxu0 %v872_v19  ;;  %1101 = vmatpush1.msra.mxu1 %v904_v20  ;;  %v913_v19 = vrot.slane %v908_v14, %v912_v13 }
  0x76   : > { %1057 = vmatprep.subr.mxu0 %v871_v22  ;;  %991 = vmatmul.mubr.f32.gmra.mxu1 %v2740_v21  ;;  %v917_v22 = vrot.slane %v908_v14, %v916_v17  ;;  %v2070_v14 = vld [vmem:[#allocation2] ss:$0 sm:$0xff] }
  0x77   : > { %1102 = vmatprep.subr.mxu1 %v903_v24  ;;  %1058 = vmatpush2.msra.mxu0 %v870_v25 }
  0x78   : > { %1103 = vmatpush1.msra.mxu1 %v902_v26  ;;  %1059 = vmatprep.subr.mxu0 %v869_v27 }
  0x79   : > { %1104 = vmatprep.subr.mxu1 %v901_v28  ;;  %1060 = vmatpush2.msra.mxu0 %v868_v29 }
  0x7a   : > { %1105 = vmatpush1.msra.mxu1 %v900_v30  ;;  %1138 = vmatprep.mubr.f32.mxu1 %v2496_v2 }
  0x7b   : > { %2061 = vmatmul.mubr.msk.f32.vlgmr.msra.gmra.mxu1 %vm684_vm0, %v2711_v16  ;;  %v1206_v16 = vld [vmem:[%s3155_s5 + $0xf8] sm:$0xff] }
  0x7c   : > { %1144 = vmatprep.mubr.f32.mxu1 %v2496_v2  ;;  %2091 = vmatprep.subr.mxu0 %v1206_v16 }
  0x7f   : > { %2062 = vmatmul.mubr.msk.f32.gmra.mxu1 %vm684_vm0, %v2717_v23  ;;  %v1190_v23 = vld [vmem:[%s3155_s5 + $0x78] sm:$0xff] }
  0xf6   : > { %v757_v31 = vpop.f32.mrf.mxu0 }
  0xf7   : > { %v768_v34 = vmul.f32 %v757_v31, %v2731_v10 }
  0xf8   : > { %v759_v32 = vpop.f32.mrf.mxu0 }
  0xf9   : > { %v769_v33 = vmul.f32 %v759_v32, %v2728_v8 }
  0xfa   : > { %v763_v35 = vpop.f32.mrf.mxu0 }
  0xfb   : > { %1061 = vmatprep.mubr.f32.mxu0 %v769_v33  ;;  %v770_v38 = vmul.f32 %v763_v35, %v2740_v21 }
  0xfc   : > { %v765_v36 = vpop.f32.mrf.mxu0  ;;  %1062 = vmatmul.mubr.f32.vlgmr.msra.gmra.mxu0 %v768_v34 }
  0xfd   : > { %v771_v37 = vmul.f32 %v765_v36, %v2736_v18  ;;  %2092 = vmatpush3.msra.mxu0 %v1190_v23 }
  0xfe   : > { %2093 = vmatprep.subr.mxu0 %v1205_v39 }
  0xff   : > { %1067 = vmatprep.mubr.f32.mxu0 %v771_v37  ;;  %2094 = vmatpush3.msra.mxu0 %v1189_v40 }
 0x100   : > { %1068 = vmatmul.mubr.f32.gmra.mxu0 %v770_v38  ;;  %2095 = vmatprep.subr.mxu0 %v1204_v41 }
 0x101   : > { %2096 = vmatpush3.msra.mxu0 %v1188_v42 }
 0x102   : > { %2097 = vmatprep.subr.mxu0 %v1203_v43 }
 0x103   : > { %2098 = vmatpush3.msra.mxu0 %v1187_v44 }
 0x104   : > { %2099 = vmatprep.subr.mxu0 %v1202_v45 }
 0x105   : > { %2100 = vmatpush3.msra.mxu0 %v1186_v46 }
 0x106   : > { %2101 = vmatprep.subr.mxu0 %v1201_v47 }
 0x107   : > { %2102 = vmatpush3.msra.mxu0 %v1185_v48 }
 0x108   : > { %2103 = vmatprep.subr.mxu0 %v1200_v49 }
 0x109   : > { %2104 = vmatpush3.msra.mxu0 %v1184_v50 }
 0x10a   : > { %2105 = vmatprep.subr.mxu0 %v1199_v51 }
 0x10b   : > { %2106 = vmatpush3.msra.mxu0 %v1183_v52 }
 0x10c   : > { %2107 = vmatprep.subr.mxu0 %v1198_v53 }
 0x10d   : > { %2108 = vmatpush3.msra.mxu0 %v1182_v54 }
 0x10e   : > { %2109 = vmatprep.subr.mxu0 %v1197_v55 }
 0x10f   : > { %2110 = vmatpush3.msra.mxu0 %v1181_v56 }
 0x110   : > { %2111 = vmatprep.subr.mxu0 %v1196_v57  ;;  %v1316_v57 = vld [vmem:[%s3157_s7 + $0x78] sm:$0xff] }
 0x111   : > { %2112 = vmatpush3.msra.mxu0 %v1180_v58  ;;  %2212 = vmatprep.subr.mxu1 %v1316_v57  ;;  %v1315_v58 = vld [vmem:[%s3157_s7 + $0x70] sm:$0xff] }
 0x112   : > { %2113 = vmatprep.subr.mxu0 %v1195_v59  ;;  %2213 = vmatpush3.msra.mxu1 %v1316_v57  ;;  %v1314_v59 = vld [vmem:[%s3157_s7 + $0x68] sm:$0xff] }
 0x113   : > { %2114 = vmatpush3.msra.mxu0 %v1179_v60  ;;  %2214 = vmatprep.subr.mxu1 %v1315_v58  ;;  %v1313_v60 = vld [vmem:[%s3157_s7 + $0x60] sm:$0xff]  ;;  %v1515_v57 = vld [vmem:[%s3161_s11 + $0xa8] sm:$0xff] }
 0x114   : > { %2115 = vmatprep.subr.mxu0 %v1194_v61  ;;  %2215 = vmatpush3.msra.mxu1 %v1315_v58  ;;  %v1312_v61 = vld [vmem:[%s3157_s7 + $0x58] sm:$0xff]  ;;  %v1499_v58 = vld [vmem:[%s3161_s11 + $0x28] sm:$0xff] }
 0x115   : > { %2116 = vmatpush3.msra.mxu0 %v1178_v62  ;;  %2216 = vmatprep.subr.mxu1 %v1314_v59  ;;  %v1311_v62 = vld [vmem:[%s3157_s7 + $0x50] sm:$0xff] }
 0x116   : > { %2117 = vmatprep.subr.mxu0 %v1193_v63  ;;  %2217 = vmatpush3.msra.mxu1 %v1314_v59  ;;  %v1310_v63 = vld [vmem:[%s3157_s7 + $0x48] sm:$0xff]  ;;  %v1514_v59 = vld [vmem:[%s3161_s11 + $0xa0] sm:$0xff] }
 0x117   : > { %2118 = vmatpush3.msra.mxu0 %v1177_v0  ;;  %2218 = vmatprep.subr.mxu1 %v1313_v60  ;;  %v1309_v0 = vld [vmem:[%s3157_s7 + $0x40] sm:$0xff] }
 0x118   : > { %2119 = vmatprep.subr.mxu0 %v1192_v1  ;;  %2219 = vmatpush3.msra.mxu1 %v1313_v60  ;;  %v1308_v1 = vld [vmem:[%s3157_s7 + $0x38] sm:$0xff]  ;;  %v1498_v60 = vld [vmem:[%s3161_s11 + $0x20] sm:$0xff] }
 0x119   : > { %2120 = vmatpush3.msra.mxu0 %v1176_v3  ;;  %2220 = vmatprep.subr.mxu1 %v1312_v61  ;;  %v1307_v3 = vld [vmem:[%s3157_s7 + $0x30] sm:$0xff] }
 0x11a   : > { %2121 = vmatprep.subr.mxu0 %v1191_v4  ;;  %2221 = vmatpush3.msra.mxu1 %v1312_v61  ;;  %v1306_v4 = vld [vmem:[%s3157_s7 + $0x28] sm:$0xff]  ;;  %v1513_v61 = vld [vmem:[%s3161_s11 + $0x98] sm:$0xff] }
 0x11b   : > { %2122 = vmatpush3.msra.mxu0 %v1175_v5  ;;  %2222 = vmatprep.subr.mxu1 %v1311_v62  ;;  %v1305_v5 = vld [vmem:[%s3157_s7 + $0x20] sm:$0xff] }
 0x11c   : > { %2223 = vmatpush3.msra.mxu1 %v1311_v62  ;;  %v1497_v62 = vld [vmem:[%s3161_s11 + $0x18] sm:$0xff] }
 0x11d   : > { %2224 = vmatprep.subr.mxu1 %v1310_v63 }
 0x11e   : > { %2225 = vmatpush3.msra.mxu1 %v1310_v63 }
 0x11f   : > { %2226 = vmatprep.subr.mxu1 %v1309_v0 }
 0x120   : > { %2227 = vmatpush3.msra.mxu1 %v1309_v0 }
 0x121   : > { %2228 = vmatprep.subr.mxu1 %v1308_v1 }
 0x122   : > { %2229 = vmatpush3.msra.mxu1 %v1308_v1  ;;  %v674_v1 = vld [vmem:[%s666_s2] sm:$0xff] }
 0x123   : > { %2230 = vmatprep.subr.mxu1 %v1307_v3 }
 0x124   : > { %2231 = vmatpush3.msra.mxu1 %v1307_v3 }
 0x125   : > { %2232 = vmatprep.subr.mxu1 %v1306_v4 }
 0x126   : > { %2233 = vmatpush3.msra.mxu1 %v1306_v4 }
 0x127   : > { %2234 = vmatprep.subr.mxu1 %v1305_v5 }
 0x128   : > { %2235 = vmatpush3.msra.mxu1 %v1305_v5 }
 0x131   : > { %v986_v6 = vpop.f32.mrf.mxu1 }
 0x132   : > { %v987_v24 = vadd.f32 %v986_v6, %v913_v19  ;;  %v1304_v6 = vld [vmem:[%s3157_s7 + $0x18] sm:$0xff] }
 0x133   : > { %v988_v9 = vpop.f32.mrf.mxu1  ;;  %2236 = vmatprep.subr.mxu1 %v1304_v6 }
 0x134   : > { %v989_v27 = vadd.f32 %v988_v9, %v917_v22  ;;  %2237 = vmatpush3.msra.mxu1 %v1304_v6  ;;  %v1302_v9 = vld [vmem:[%s3157_s7 + $0x8] sm:$0xff] }
 0x135   : > { %2238 = vmatprep.subr.mxu1 %v1303_v7 }
 0x136   : > { %v992_v12 = vpop.f32.mrf.mxu1  ;;  %2239 = vmatpush3.msra.mxu1 %v1303_v7  ;;  %v675_v7 = vld [vmem:[%s666_s2 + $0x8] sm:$0xff]  ;;  %s2427_s2 = scalar_lea.vmem %s1956_s25, 16 }
 0x137   : > { %v993_v30 = vadd.f32 %v992_v12, %v913_v19  ;;  %2240 = vmatprep.subr.mxu1 %v1302_v9  ;;  %v1301_v12 = vld [vmem:[%s3157_s7] sm:$0xff]  ;;  %p2428_p8 = scmp.ne.s32.totalorder %s1956_s25, %s2427_s2 }
 0x138   : > { %v994_v15 = vpop.f32.mrf.mxu1  ;;  %2241 = vmatpush3.msra.mxu1 %v1302_v9  ;;  %v2067_v19 = vld [vmem:[%s3156_s6] ss:$0 sm:$0xff] }
 0x139   : > { %v995_v35 = vadd.f32 %v994_v15, %v917_v22  ;;  %2242 = vmatprep.subr.mxu1 %v1301_v12  ;;  %v2497_v15 = vmov 0   ;;  %p2429_p9 = pnand %p2428_p8, %p2646_p5 }
 0x13a   : > { %2243 = vmatpush3.msra.mxu1 %v1301_v12  ;;  %2357 = vset.pattern.permute.xlu0 %v2497_v15  ;;  %v1512_v12 = vld [vmem:[%s3161_s11 + $0x90] sm:$0xff] }
 0x13b   : > { %v1140_v20 = vpop.f32.mrf.mxu1  ;;  %2358 = vset.pattern.permute.xlu1 %v2497_v15  ;;  %1324 = vperm.xlu0 %2357, %v2070_v14   ;;  %v1496_v14 = vld [vmem:[%s3161_s11 + $0x10] sm:$0xff]  ;;  %v1511_v15 = vld [vmem:[%s3161_s11 + $0x88] sm:$0xff]  ;;  %p2430_p10 = pneg %p2429_p9 }
 0x13d   : > { %v1142_v26 = vpop.f32.mrf.mxu1 }
 0x13f   : > { %v1146_v34 = vpop.f32.mrf.mxu1 }
 0x141   : > { %v1148_v41 = vpop.f32.mrf.mxu1 }
 0x1b6   : > { %v1325_v0 = vpop.permute.xlu0 %1324 }
 0x1bc   : > { %v1063_v25 = vpop.f32.mrf.mxu0 }
 0x1bd   : > { %v1064_v28 = vadd.f32 %v1063_v25, %v987_v24 }
 0x1be   : > { %v1065_v29 = vpop.f32.mrf.mxu0 }
 0x1bf   : > { %v1141_v31 = vadd.f32 %v1140_v20, %v1064_v28  ;;  %v1066_v32 = vadd.f32 %v1065_v29, %v989_v27 }
 0x1c0   : > { %v1069_v33 = vpop.f32.mrf.mxu0 }
 0x1c1   : > { %v2063_v36 = vmul.f32 -1.442695, %v1141_v31  ;;  %v1143_v37 = vadd.f32 %v1142_v26, %v1066_v32  ;;  %v1070_v38 = vadd.f32 %v1069_v33, %v993_v30 }
 0x1c2   : > { %v1071_v16 = vpop.f32.mrf.mxu0 }
 0x1c3   : > { %2359 = vpow2.f32 %v2063_v36  ;;  %v2064_v23 = vmul.f32 -1.442695, %v1143_v37  ;;  %v1147_v39 = vadd.f32 %v1146_v34, %v1070_v38  ;;  %v1072_v40 = vadd.f32 %v1071_v16, %v995_v35  ;;  %v1405_v37 = vld [vmem:[%s3160_s10 + $0x8] sm:$0xff]  ;;  %v1404_v38 = vld [vmem:[%s3160_s10] sm:$0xff]  ;;  %v1525_v16 = vld [vmem:[%s3161_s11 + $0xf8] sm:$0xff] }
 0x1c4   : > { %1443 = vmatprep.subr.mxu1 %v1405_v37  ;;  %2147 = vmatprep.subr.mxu0 %v1525_v16  ;;  %v1632_v37 = vld [vmem:[%s3163_s13 + $0x18] sm:$0xff]  ;;  %v1630_v16 = vld [vmem:[%s3163_s13 + $0x8] sm:$0xff] }
 0x1c5   : > { %2361 = vpow2.f32 %v2064_v23  ;;  %v2065_v42 = vmul.f32 -1.442695, %v1147_v39  ;;  %v1149_v43 = vadd.f32 %v1148_v41, %v1072_v40  ;;  %v1509_v23 = vld [vmem:[%s3161_s11 + $0x78] sm:$0xff]  ;;  %v1524_v39 = vld [vmem:[%s3161_s11 + $0xf0] sm:$0xff]  ;;  %v1523_v41 = vld [vmem:[%s3161_s11 + $0xe8] sm:$0xff] }
 0x1c6   : > { %v1508_v40 = vld [vmem:[%s3161_s11 + $0x70] sm:$0xff] }
 0x1c7   : > { %2363 = vpow2.f32 %v2065_v42  ;;  %v2066_v44 = vmul.f32 -1.442695, %v1149_v43  ;;  %v1507_v42 = vld [vmem:[%s3161_s11 + $0x68] sm:$0xff]  ;;  %v1522_v43 = vld [vmem:[%s3161_s11 + $0xe0] sm:$0xff] }
 0x1c9   : > { %2365 = vpow2.f32 %v2066_v44  ;;  %v1506_v44 = vld [vmem:[%s3161_s11 + $0x60] sm:$0xff] }
 0x1d0   : > { %v2360_v45 = vpop.eup %2359 }
 0x1d1   : > { %v1163_v47 = vadd.f32 1.0, %v2360_v45  ;;  %v1521_v45 = vld [vmem:[%s3161_s11 + $0xd8] sm:$0xff] }
 0x1d2   : > { %v2362_v46 = vpop.eup %2361 }
 0x1d3   : > { %v1164_v48 = vadd.f32 1.0, %v2362_v46  ;;  %v1505_v46 = vld [vmem:[%s3161_s11 + $0x58] sm:$0xff] }
 0x1d4   : > { %v2364_v49 = vpop.eup %2363 }
 0x1d5   : > { %2367 = vrcp.f32 %v1164_v48  ;;  %v1165_v51 = vadd.f32 1.0, %v2364_v49  ;;  %v1504_v48 = vld [vmem:[%s3161_s11 + $0x50] sm:$0xff]  ;;  %v1519_v49 = vld [vmem:[%s3161_s11 + $0xc8] sm:$0xff] }
 0x1d6   : > { %v2366_v50 = vpop.eup %2365  ;;  %2369 = vrcp.f32 %v1163_v47  ;;  %v1520_v47 = vld [vmem:[%s3161_s11 + $0xd0] sm:$0xff] }
 0x1d7   : > { %v1166_v52 = vadd.f32 1.0, %v2366_v50  ;;  %v1503_v50 = vld [vmem:[%s3161_s11 + $0x48] sm:$0xff] }
 0x1d9   : > { %2371 = vrcp.f32 %v1166_v52  ;;  %v1502_v52 = vld [vmem:[%s3161_s11 + $0x40] sm:$0xff] }
 0x1da   : > { %2373 = vrcp.f32 %v1165_v51  ;;  %v1518_v51 = vld [vmem:[%s3161_s11 + $0xc0] sm:$0xff] }
 0x1e2   : > { %v2368_v53 = vpop.eup %2367 }
 0x1e3   : > { %v2370_v54 = vpop.eup %2369  ;;  %1278 = vmatprep.mubr.f32.mxu0 %v2368_v53  ;;  %v1517_v53 = vld [vmem:[%s3161_s11 + $0xb8] sm:$0xff] }
 0x1e4   : > { %1279 = vmatmul.mubr.f32.vlgmr.msra.gmra.mxu0 %v2370_v54  ;;  %v1501_v54 = vld [vmem:[%s3161_s11 + $0x38] sm:$0xff] }
 0x1e5   : > { %2148 = vmatpush3.msra.mxu0 %v1509_v23  ;;  %v1629_v23 = vld [vmem:[%s3163_s13] sm:$0xff] }
 0x1e6   : > { %v2372_v55 = vpop.eup %2371  ;;  %2149 = vmatprep.subr.mxu0 %v1524_v39 }
 0x1e7   : > { %v2374_v56 = vpop.eup %2373  ;;  %1283 = vmatprep.mubr.f32.mxu0 %v2372_v55  ;;  %2150 = vmatpush3.msra.mxu0 %v1508_v40  ;;  %v1516_v55 = vld [vmem:[%s3161_s11 + $0xb0] sm:$0xff]  ;;  %v2073_v40 = vld [vmem:[%s3162_s12] ss:$0 sm:$0xff] }
 0x1e8   : > { %1284 = vmatmul.mubr.f32.gmra.mxu0 %v2374_v56  ;;  %2151 = vmatprep.subr.mxu0 %v1523_v41  ;;  %v1500_v56 = vld [vmem:[%s3161_s11 + $0x30] sm:$0xff] }
 0x1e9   : > { %2152 = vmatpush3.msra.mxu0 %v1507_v42 }
 0x1ea   : > { %2153 = vmatprep.subr.mxu0 %v1522_v43 }
 0x1eb   : > { %2154 = vmatpush3.msra.mxu0 %v1506_v44 }
 0x1ec   : > { %2155 = vmatprep.subr.mxu0 %v1521_v45 }
 0x1ed   : > { %2156 = vmatpush3.msra.mxu0 %v1505_v46 }
 0x1ee   : > { %2157 = vmatprep.subr.mxu0 %v1520_v47 }
 0x1ef   : > { %2158 = vmatpush3.msra.mxu0 %v1504_v48 }
 0x1f0   : > { %2159 = vmatprep.subr.mxu0 %v1519_v49 }
 0x1f1   : > { %2160 = vmatpush3.msra.mxu0 %v1503_v50 }
 0x1f2   : > { %2161 = vmatprep.subr.mxu0 %v1518_v51 }
 0x1f3   : > { %2162 = vmatpush3.msra.mxu0 %v1502_v52 }
 0x1f4   : > { %2163 = vmatprep.subr.mxu0 %v1517_v53 }
 0x1f5   : > { %2164 = vmatpush3.msra.mxu0 %v1501_v54 }
 0x1f6   : > { %2165 = vmatprep.subr.mxu0 %v1516_v55 }
 0x1f7   : > { %2166 = vmatpush3.msra.mxu0 %v1500_v56 }
 0x1f8   : > { %2167 = vmatprep.subr.mxu0 %v1515_v57 }
 0x1f9   : > { %2168 = vmatpush3.msra.mxu0 %v1499_v58  ;;  %v1749_v58 = vld [vmem:[%s3165_s15 + $0x38] sm:$0xff] }
 0x1fa   : > { %2169 = vmatprep.subr.mxu0 %v1514_v59  ;;  %v1748_v59 = vld [vmem:[%s3165_s15 + $0x30] sm:$0xff] }
 0x1fb   : > { %2170 = vmatpush3.msra.mxu0 %v1498_v60  ;;  %v1747_v60 = vld [vmem:[%s3165_s15 + $0x28] sm:$0xff] }
 0x1fc   : > { %2171 = vmatprep.subr.mxu0 %v1513_v61  ;;  %v1746_v61 = vld [vmem:[%s3165_s15 + $0x20] sm:$0xff] }
 0x1fd   : > { %2172 = vmatpush3.msra.mxu0 %v1497_v62  ;;  %v1745_v62 = vld [vmem:[%s3165_s15 + $0x18] sm:$0xff] }
 0x1fe   : > { %2173 = vmatprep.subr.mxu0 %v1512_v12 }
 0x1ff   : > { %2174 = vmatpush3.msra.mxu0 %v1496_v14 }
 0x200   : > { %2175 = vmatprep.subr.mxu0 %v1511_v15 }
 0x2a4   : > { %v2123_v17 = vpop.f32.mrf.mxu0 }
 0x2a6   : > { %v2124_v20 = vpop.f32.mrf.mxu0 }
 0x2a7   : > { %v2125_v22 = vadd.f32 %v2124_v20, %v2123_v17  ;;  %v1495_v17 = vld [vmem:[%s3161_s11 + $0x8] sm:$0xff]  ;;  %v1494_v20 = vld [vmem:[%s3161_s11] sm:$0xff] }
 0x2a8   : > { %v2126_v24 = vpop.f32.mrf.mxu0  ;;  %2176 = vmatpush3.msra.mxu0 %v1495_v17 }
 0x2a9   : > { %v1281_v25 = vadd.f32 %v2125_v22, %v2067_v19  ;;  %v2399_v22 = vld [vmem:[%s2702_s18] sm:$0xff] }
 0x2aa   : > { %v2127_v26 = vpop.f32.mrf.mxu0  ;;  %1610 = vrot.lane.b32.xlu0 %v2399_v22, %s2498_s20 }
 0x2ab   : > { %v2068_v27 = vmul.f32 -1.442695, %v1281_v25  ;;  %v2128_v28 = vadd.f32 %v2127_v26, %v2126_v24  ;;  %v2400_v24 = vld [vmem:[%s2702_s18 + $0x8] sm:$0xff]  ;;  %s2499_s18 = smov 64  }
 0x2ac   : > { %1612 = vrot.lane.b32.xlu1 %v2400_v24, %s2498_s20 }
 0x2ad   : > { %2375 = vpow2.f32 %v2068_v27  ;;  %v1286_v29 = vadd.f32 %v2128_v28, %v2067_v19  ;;  %v1510_v19 = vld [vmem:[%s3161_s11 + $0x80] sm:$0xff] }
 0x2ae   : > { %2177 = vmatprep.subr.mxu0 %v1510_v19 }
 0x2af   : > { %v2069_v30 = vmul.f32 -1.442695, %v1286_v29  ;;  %2178 = vmatpush3.msra.mxu0 %v1494_v20 }
 0x2b0   : > { %2293 = vmatprep.subr.mxu0 %v2496_v2 }
 0x2b1   : > { %2377 = vpow2.f32 %v2069_v30 }
 0x2ba   : > { %v2376_v31 = vpop.eup %2375 }
 0x2bb   : > { %v1295_v32 = vadd.f32 1.0, %v2376_v31 }
 0x2bd   : > { %2379 = vrcp.f32 %v1295_v32 }
 0x2be   : > { %v2378_v33 = vpop.eup %2377 }
 0x2bf   : > { %v1296_v34 = vadd.f32 1.0, %v2378_v33  ;;  %v1640_v33 = vld [vmem:[%s3163_s13 + $0x58] sm:$0xff] }
 0x2c1   : > { %2381 = vrcp.f32 %v1296_v34  ;;  %v1635_v34 = vld [vmem:[%s3163_s13 + $0x30] sm:$0xff] }
 0x2ca   : > { %v2380_v35 = vpop.eup %2379 }
 0x2cb   : > { %2244 = vmatprep.mubr.f32.mxu1 %v2380_v35  ;;  %v1634_v35 = vld [vmem:[%s3163_s13 + $0x28] sm:$0xff] }
 0x2ce   : > { %v2382_v36 = vpop.eup %2381 }
 0x2cf   : > { %2245 = vmatmul.mubr.f32.vlgmr.msra.gmra.mxu1 %v2382_v36  ;;  %v1633_v36 = vld [vmem:[%s3163_s13 + $0x20] sm:$0xff] }
 0x2d0   : > { %1477 = vmatprep.mubr.f32.mxu1 %v2496_v2  ;;  %1444 = vmatpush1.msra.mxu1 %v1404_v38  ;;  %v1631_v38 = vld [vmem:[%s3163_s13 + $0x10] sm:$0xff] }
 0x2d1   : > { %2247 = vmatprep.subr.mxu1 %v1640_v33 }
 0x31c   : > { %v1611_v51 = vpop.permute.xlu0 %1610 }
 0x31e   : > { %v1613_v50 = vpop.permute.xlu1 %1612 }
 0x38f   : > { %v2246_v63 = vpop.f32.mrf.mxu1 }
 0x390   : > { %v1399_v5 = vadd.f32 %v2246_v63, %v1325_v0  ;;  %v1744_v63 = vld [vmem:[%s3165_s15 + $0x10] sm:$0xff] }
 0x391   : > { %v1393_v3 = vpop.f32.mrf.mxu1 }
 0x392   : > { %v1394_v4 = vadd.f32 %v1393_v3, %v1325_v0  ;;  %v1403_v9 = vmul.f32 %v1399_v5, %v675_v7  ;;  %v1743_v0 = vld [vmem:[%s3165_s15 + $0x8] sm:$0xff]  ;;  %v2074_v3 = vld [vmem:[%s3164_s14] ss:$0 sm:$0xff] }
 0x394   : > { %v1402_v6 = vmul.f32 %v1394_v4, %v674_v1  ;;  %v1742_v1 = vld [vmem:[%s3165_s15] sm:$0xff] }
 0x396   : > { %2071 = vmatmul.mubr.msk.f32.vlgmr.msra.gmra.mxu1 %vm1406_vm1, %v1402_v6 }
 0x397   : > { %1483 = vmatprep.mubr.f32.mxu1 %v2496_v2  ;;  %2248 = vmatpush3.msra.mxu1 %v1640_v33 }
 0x39a   : > { %2072 = vmatmul.mubr.msk.f32.gmra.mxu1 %vm1406_vm1, %v1403_v9 }
 0x456   : > { %v1479_v25 = vpop.f32.mrf.mxu1 }
 0x457   : > { %v1490_v28 = vmul.f32 %v1479_v25, %v2731_v10  ;;  %v1638_v10 = vld [vmem:[%s3163_s13 + $0x48] sm:$0xff]  ;;  %v2079_v25 = vld [vmem:[%s3166_s16] ss:$0 sm:$0xff] }
 0x458   : > { %v1481_v26 = vpop.f32.mrf.mxu1 }
 0x459   : > { %v1491_v27 = vmul.f32 %v1481_v26, %v2728_v8  ;;  %v1639_v8 = vld [vmem:[%s3163_s13 + $0x50] sm:$0xff] }
 0x45a   : > { %v1485_v29 = vpop.f32.mrf.mxu1  ;;  %2249 = vmatprep.subr.mxu1 %v1639_v8 }
 0x45b   : > { %1597 = vmatprep.mubr.f32.mxu0 %v1491_v27  ;;  %v1492_v32 = vmul.f32 %v1485_v29, %v2740_v21  ;;  %2250 = vmatpush3.msra.mxu1 %v1639_v8  ;;  %v1636_v21 = vld [vmem:[%s3163_s13 + $0x38] sm:$0xff] }
 0x45c   : > { %v1487_v30 = vpop.f32.mrf.mxu1  ;;  %1598 = vmatmul.mubr.f32.vlgmr.msra.gmra.mxu0 %v1490_v28  ;;  %2251 = vmatprep.subr.mxu1 %v1638_v10 }
 0x45d   : > { %v1493_v31 = vmul.f32 %v1487_v30, %v2736_v18  ;;  %v1637_v18 = vld [vmem:[%s3163_s13 + $0x40] sm:$0xff]  ;;  %2252 = vmatpush3.msra.mxu1 %v1638_v10 }
 0x45e   : > { %2253 = vmatprep.subr.mxu1 %v1637_v18 }
 0x45f   : > { %1602 = vmatprep.mubr.f32.mxu0 %v1493_v31  ;;  %2254 = vmatpush3.msra.mxu1 %v1637_v18 }
 0x460   : > { %1603 = vmatmul.mubr.f32.gmra.mxu0 %v1492_v32  ;;  %2255 = vmatprep.subr.mxu1 %v1636_v21 }
 0x461   : > { %2256 = vmatpush3.msra.mxu1 %v1636_v21  ;;  %2297 = vmatprep.mubr.msk.f32.mxu0 %vm2500_vm4, %v2496_v2 }
 0x462   : > { %2257 = vmatprep.subr.mxu1 %v1635_v34 }
 0x463   : > { %2258 = vmatpush3.msra.mxu1 %v1635_v34  ;;  %v1850_v34 = vld [vmem:[%s3167_s17] sm:$0x1] }
 0x464   : > { %2259 = vmatprep.subr.mxu1 %v1634_v35 }
 0x465   : > { %2260 = vmatpush3.msra.mxu1 %v1634_v35 }
 0x466   : > { %2261 = vmatprep.subr.mxu1 %v1633_v36 }
 0x467   : > { %2262 = vmatpush3.msra.mxu1 %v1633_v36 }
 0x468   : > { %2263 = vmatprep.subr.mxu1 %v1632_v37 }
 0x469   : > { %2264 = vmatpush3.msra.mxu1 %v1632_v37 }
 0x46a   : > { %2265 = vmatprep.subr.mxu1 %v1631_v38 }
 0x46b   : > { %2266 = vmatpush3.msra.mxu1 %v1631_v38 }
 0x46c   : > { %2267 = vmatprep.subr.mxu1 %v1630_v16 }
 0x46d   : > { %2268 = vmatpush3.msra.mxu1 %v1630_v16 }
 0x46e   : > { %2269 = vmatprep.subr.mxu1 %v1629_v23 }
 0x46f   : > { %2270 = vmatpush3.msra.mxu1 %v1629_v23 }
 0x470   : > { %2274 = vmatprep.subr.mxu1 %v1749_v58 }
 0x51c   : > { %v2179_v39 = vpop.f32.mrf.mxu0 }
 0x51e   : > { %v2180_v41 = vpop.f32.mrf.mxu0 }
 0x51f   : > { %v2181_v42 = vadd.f32 %v2180_v41, %v2179_v39 }
 0x520   : > { %v2182_v43 = vpop.f32.mrf.mxu0 }
 0x521   : > { %v1600_v44 = vadd.f32 %v2181_v42, %v2073_v40 }
 0x522   : > { %v2183_v45 = vpop.f32.mrf.mxu0 }
 0x523   : > { %v2184_v46 = vadd.f32 %v2183_v45, %v2182_v43  ;;  %v1608_v47 = vmul.f32 %v2399_v22, %v1600_v44  ;;  %v1624_v52 = vsel %vm684_vm0, %v1600_v44, %v1611_v51 }
 0x525   : > { %v1605_v48 = vadd.f32 %v2184_v46, %v2073_v40  ;;  %1618 = vrot.lane.b32.xlu1 %v1608_v47, %s2499_s18 }
 0x527   : > { %v1609_v49 = vmul.f32 %v2400_v24, %v1605_v48  ;;  %v1625_v55 = vsel %vm684_vm0, %v1605_v48, %v1613_v50  ;;  %v1851_v24 = vld [vmem:[#allocation3] sm:$0x1] }
 0x529   : > { %1620 = vrot.lane.b32.xlu0 %v1609_v49, %s2499_s18  ;;  %1854 = vperm.xlu1 %2358, %v1851_v24   ;;  %s2087_s18 = sshll.u32 %s2629_s8, 4  ;;  %s2501_s8 = smov [#allocation7]  }
 0x52a   : > { %s3115_s3 = scalar_lea.hbm %s3168_s19, %s2087_s18  ;;  %s2431_s0 = sshll.u32 %s2501_s8, 4  ;;  %s2432_s0 = int_to_ptr.vmem [resolvable:$false] %s2431_s0 }
 0x52b   : > { %s2433_s20 = scalar_lea.vmem %s2432_s0, 32  ;;  %p2434_p11 = scmp.lt.s32.totalorder %s1956_s25, %s2432_s0 }
 0x52c   : > { %p2435_p12 = scmp.lt.s32.totalorder %s2433_s20, %s2427_s2 }
 0x52e   : > { %p2436_p13 = por %p2435_p12, %p2434_p11 }
 0x530   : > { %p2437_p0 = pnand %p2436_p13, %p2430_p10 }
 0x597   : > { %v1619_v53 = vpop.permute.xlu1 %1618 }
 0x598   : > { %v1627_v54 = vsel %vm1626_vm2, %v1624_v52, %v1619_v53 }
 0x599   : > { %2271 = vmatprep.mubr.msk.f32.mxu1 %vm1648_vm3, %v1627_v54 }
 0x59b   : > { %v1621_v56 = vpop.permute.xlu0 %1620 }
 0x59c   : > { %v1628_v57 = vsel %vm1626_vm2, %v1625_v55, %v1621_v56 }
 0x59d   : > { %2272 = vmatmul.mubr.msk.f32.vlgmr.msra.gmra.mxu1 %vm1648_vm3, %v1628_v57 }
 0x59e   : > { %2275 = vmatpush3.msra.mxu1 %v1749_v58 }
 0x59f   : > { %2276 = vmatprep.subr.mxu1 %v1748_v59 }
 0x5a0   : > { %2277 = vmatpush3.msra.mxu1 %v1748_v59 }
 0x5a1   : > { %2278 = vmatprep.subr.mxu1 %v1747_v60 }
 0x5a2   : > { %2279 = vmatpush3.msra.mxu1 %v1747_v60 }
 0x5a3   : > { %2280 = vmatprep.subr.mxu1 %v1746_v61 }
 0x5a4   : > { %2281 = vmatpush3.msra.mxu1 %v1746_v61  ;;  %v1855_v35 = vpop.permute.xlu1 %1854 }
 0x5a5   : > { %2282 = vmatprep.subr.mxu1 %v1745_v62  ;;  %v1860_v36 = vrot.slane %v1855_v35, %v912_v13 }
 0x5a6   : > { %2283 = vmatpush3.msra.mxu1 %v1745_v62 }
 0x5a7   : > { %2284 = vmatprep.subr.mxu1 %v1744_v63 }
 0x5a8   : > { %2285 = vmatpush3.msra.mxu1 %v1744_v63 }
 0x5a9   : > { %2286 = vmatprep.subr.mxu1 %v1743_v0 }
 0x5aa   : > { %2287 = vmatpush3.msra.mxu1 %v1743_v0 }
 0x5ab   : > { %2288 = vmatprep.subr.mxu1 %v1742_v1 }
 0x5ac   : > { %2289 = vmatpush3.msra.mxu1 %v1742_v1 }
 0x65d   : > { %v2273_v4 = vpop.f32.mrf.mxu1 }
 0x65e   : > { %v1727_v5 = vadd.f32 %v2273_v4, %v2074_v3 }
 0x65f   : > { %v1721_v6 = vpop.f32.mrf.mxu1 }
 0x660   : > { %v2078_v7 = vmul.f32 -1.442695, %v1727_v5  ;;  %v1722_v9 = vadd.f32 %v2074_v3, %v1721_v6 }
 0x662   : > { %2383 = vpow2.f32 %v2078_v7  ;;  %v2077_v12 = vmul.f32 -1.442695, %v1722_v9 }
 0x664   : > { %2385 = vpow2.f32 %v2077_v12 }
 0x66f   : > { %v2384_v14 = vpop.eup %2383 }
 0x670   : > { %v1737_v17 = vadd.f32 1.0, %v2384_v14 }
 0x671   : > { %v2386_v15 = vpop.eup %2385 }
 0x672   : > { %v1736_v19 = vadd.f32 1.0, %v2386_v15 }
 0x674   : > { %2387 = vrcp.f32 %v1736_v19 }
 0x675   : > { %2389 = vrcp.f32 %v1737_v17 }
 0x681   : > { %v2388_v20 = vpop.eup %2387 }
 0x682   : > { %v2390_v22 = vpop.eup %2389  ;;  %2290 = vmatprep.mubr.msk.f32.mxu1 %vm1626_vm2, %v2388_v20 }
 0x683   : > { %2291 = vmatmul.mubr.msk.f32.vlgmr.msra.gmra.mxu1 %vm1626_vm2, %v2390_v22 }
 0x743   : > { %v2292_v26 = vpop.f32.mrf.mxu1 }
 0x744   : > { %v1835_v27 = vadd.f32 %v2292_v26, %v2079_v25 }
 0x745   : > { %v1829_v28 = vpop.f32.mrf.mxu1 }
 0x746   : > { %v2083_v29 = vmul.f32 -1.442695, %v1835_v27  ;;  %v1830_v30 = vadd.f32 %v2079_v25, %v1829_v28 }
 0x748   : > { %2391 = vpow2.f32 %v2083_v29  ;;  %v2082_v31 = vmul.f32 -1.442695, %v1830_v30 }
 0x74a   : > { %2393 = vpow2.f32 %v2082_v31 }
 0x755   : > { %v2392_v32 = vpop.eup %2391 }
 0x756   : > { %v1845_v33 = vadd.f32 1.0, %v2392_v32 }
 0x757   : > { %v2394_v8 = vpop.eup %2393 }
 0x758   : > { %2395 = vrcp.f32 %v1845_v33  ;;  %v1844_v10 = vadd.f32 1.0, %v2394_v8 }
 0x75a   : > { %2397 = vrcp.f32 %v1844_v10 }
 0x765   : > { %v2396_v18 = vpop.eup %2395 }
 0x766   : > { %2294 = vmatpush3.xpose.msk.msra.mxu0 %vm684_vm0, %v2396_v18 }
 0x767   : > { %2295 = vmatprep.subr.mxu0 %v2496_v2  ;;  %v2398_v21 = vpop.eup %2397 }
 0x76a   : > { %2296 = vmatpush3.xpose.msk.msra.mxu0 %vm684_vm0, %v2398_v21 }
 0x76d   : > { %2298 = vmatmul.mubr.msk.f32.vlgmr.msra.gmra.mxu0 %vm684_vm0, %v1850_v34 }
 0x82d   : > { %v1936_v37 = vpop.f32.mrf.mxu0 }
 0x82e   : > { %v1937_v2 = vadd.f32 %v1936_v37, %v1860_v36 }
 0x82f   : > { %v2299_v38 = vpop.f32.mrf.mxu0 }
 0x830   : > { %1941 = vst.msk [vmem:[%s648_s26] sm:$0x1] %vm1940_vm5, %v1937_v2 }
 0x831   : > { %2440 = shalt.err (!%p2437_p0)
}
 0x832   : > { %s2441_s24 = scalar_lea.hbm %s3115_s3, 16  ;;  %s2445_s26 = scalar_lea.hbm %s3168_s19, 64 }
 0x833   : > { %p2442_p1 = scmp.ne.s32.totalorder %s3115_s3, %s2441_s24  ;;  %p2446_p4 = scmp.lt.s32.totalorder %s3115_s3, %s3168_s19 }
 0x834   : > { %p2447_p7 = scmp.lt.s32.totalorder %s2445_s26, %s2441_s24 }
 0x835   : > { %p2443_p2 = pnand %p2442_p1, %p2646_p5 }
 0x836   : > { %p2448_p6 = por %p2447_p7, %p2446_p4 }
 0x837   : > { %p2444_p3 = pneg %p2443_p2 }
 0x839   : > { %p2449_p8 = pnand %p2448_p6, %p2444_p3 }
 0x83b   : > { %2452 = shalt.err (!%p2449_p8)
}
 0x83c   : > { %2304 = dma.vmem_to_hbm [thread:$0]  (%p2646_p5), %s1956_s25, 16, %s3115_s3, %s1943_s21  }
 0x83d PF: > { %s3191_s2 = sld [smem:[#allocation13_spill]]  ;;  %p2316_p9 = scmp.ge.s32.totalorder %s2491_s23, 2 }
 0x83e   : > { %s1967_s8 = sand.u32 1, %s2479_s1  }
 0x83f   : > { %s1968_s0 = scalar_lea.sflag [#allocation6], %s1967_s8 }
 0x843   : > { %p3192_p10 = scmp.ne.s32.totalorder %s3191_s2, 0 }
 0x845   : > { %p2311_p11 = pnand %p2316_p9, %p3192_p10 }
 0x847   : > { %p2312_p12 = pneg %p2311_p11 }
 0x849   : > { %2474 = dma.done.wait (%p2312_p12), %s1968_s0, 16  }
 0x84a   : > { %2476 = vsyncadd (%p2312_p12), %s1968_s0, 4294967280  ;;  %s3193_s23 = sld [smem:[#allocation11_spill]]  ;;  %s3196_s1 = smov %s2483_s22 }
 0x84b   : > { %s3194_s20 = sld [smem:[#allocation10_spill]] }
 0x84c   : > { %s3195_s2 = sld [smem:[#allocation12_spill]] }
 0x850   : > { %p34_p13 = scmp.ge.s32.totalorder %s3193_s23, 6  }
 0x851   : > { %s3197_s22 = smov %s3194_s20 }
 0x852   :  { %36 = sbr.rel (!%p34_p13) target bundleno = 9 (0x9), region = 142 }
 0x857   :  { %1972 = vsyncpa [#allocation5], 1 }
 0x858   :  { %1974 = vsyncpa [#allocation5 + $0x1], 1 }
 0x859   :  { %1975 = vsyncpa [#allocation6], 1 }
 0x85a   :  { %1977 = vsyncpa [#allocation6 + $0x1], 1 }

</bundles_post_ra>
